<compile_context>
chip_gen: v7x
topology: tpu7x:2x2x1
jax: 0.10.0
libtpu: 0.0.40
codegen_flags: <defaults>
</compile_context>

<pallas_src>
import jax
import jax.numpy as jnp
from jax.experimental import pallas as pl
from jax.experimental.pallas import tpu as pltpu

IN_FEATURES = 1184
CORE_DIM = 256
N_ACTIVE_CORES = 9             # cores 0..8 are the only ones EICLayer1.forward uses
N_CELLS = 16                   # 4 x 4 grid cells; 7 of them never written by torch
WRAP = 96                      # core 4 wraps: x[:,1024:1184] ++ x[:,0:96]
TAIL = IN_FEATURES - 1024      # 160

# torch circular-walk chunk start for each active core (core 4 wraps).
_START = (0, 256, 512, 768, 1024, 96, 352, 608, 864)
# core k -> flat 4x4 grid cell (row = k // 3, col = k % 3)
_CELL = tuple(4 * (k // 3) + (k % 3) for k in range(N_ACTIVE_CORES))


def _eic_kernel(x_ref, w_ref, o_ref):
    """x_ref: (TB, 1184) f32, w_ref: (9, 256, 256) f32/bf16, o_ref: (TB, 4096) f32."""
    tb = o_ref.shape[0]
    wdt = w_ref.dtype

    def cast(v):  # cast MXU operand to the weight dtype (no-op on the f32 path)
        return v if v.dtype == wdt else v.astype(wdt)

    # TODO(synk): torch.empty leaves the row-3 / col-3 cells uninitialized; we
    # define them as zeros, written straight into the lane-dense output slab.
    o_ref[:, 3 * CORE_DIM:4 * CORE_DIM] = jnp.zeros((tb, CORE_DIM), o_ref.dtype)
    o_ref[:, 7 * CORE_DIM:8 * CORE_DIM] = jnp.zeros((tb, CORE_DIM), o_ref.dtype)
    o_ref[:, 11 * CORE_DIM:] = jnp.zeros((tb, 5 * CORE_DIM), o_ref.dtype)

    for k in range(N_ACTIVE_CORES):
        if k == 4:
            # Wrapped chunk: two accumulating matmuls over 128-aligned windows.
            y = jnp.dot(cast(x_ref[:, 1024:IN_FEATURES]), w_ref[4, :TAIL, :],
                        preferred_element_type=jnp.float32)
            y = y + jnp.dot(cast(x_ref[:, :WRAP]), w_ref[4, TAIL:, :],
                            preferred_element_type=jnp.float32)
        else:
            s = _START[k]
            y = jnp.dot(cast(x_ref[:, s:s + CORE_DIM]), w_ref[k],
                        preferred_element_type=jnp.float32)
        # Core.forward: y + (-0.5 * max(y, dim=1, keepdim)) then sigmoid.
        z = y - 0.5 * jnp.max(y, axis=1, keepdims=True)
        act = 0.5 * jnp.tanh(0.5 * z) + 0.5          # == sigmoid(z), single EUP op
        c = _CELL[k]
        o_ref[:, c * CORE_DIM:(c + 1) * CORE_DIM] = act.astype(o_ref.dtype)


def pack_weights(weights, dtype=jnp.float32):
    """weights: (9, 256, 256) in nn.Linear (out_features, in_features) layout.

    Returns (9, 256, 256) transposed to (in, out) MXU layout.  dtype=bfloat16
    enables the bf16-operand MXU path (recommended on v5e; ~1e-3 looser)."""
    assert weights.shape == (N_ACTIVE_CORES, CORE_DIM, CORE_DIM)
    return jnp.swapaxes(weights, 1, 2).astype(dtype)


def _round_up(a, m):
    return (a + m - 1) // m * m


@jax.jit
def eic_layer1(x, w_packed):
    """x: (B, 1184) f32, w_packed: pack_weights(...)  ->  (B, 4, 4, 256) f32."""
    B = x.shape[0]
    assert x.shape == (B, IN_FEATURES)
    assert w_packed.shape == (N_ACTIVE_CORES, CORE_DIM, CORE_DIM)

    # Even number (>= 2) of batch tiles -> even megacore split on v7x even for
    # small B; tile size capped at 512 rows (multiple of 8).
    num_tiles = max(2, 2 * pl.cdiv(B, 1024))
    tile_b = _round_up(pl.cdiv(B, num_tiles), 8)
    bp = tile_b * num_tiles
    xp = x if bp == B else jnp.pad(x, ((0, bp - B), (0, 0)))

    out = pl.pallas_call(
        _eic_kernel,
        out_shape=jax.ShapeDtypeStruct((bp, N_CELLS * CORE_DIM), jnp.float32),
        grid_spec=pltpu.PrefetchScalarGridSpec(
            num_scalar_prefetch=0,
            grid=(num_tiles,),
            in_specs=[
                # raw x, full-width block (no host-side concat / extension)
                pl.BlockSpec((tile_b, IN_FEATURES), lambda i: (i, 0)),
                # constant block index -> weights DMA'd once, VMEM-resident
                pl.BlockSpec((N_ACTIVE_CORES, CORE_DIM, CORE_DIM), lambda i: (0, 0, 0)),
            ],
            out_specs=pl.BlockSpec((tile_b, N_CELLS * CORE_DIM), lambda i: (i, 0)),
        ),
        compiler_params=pltpu.CompilerParams(
            dimension_semantics=("parallel",),        # batch-parallel megacore split
            vmem_limit_bytes=32 * 1024 * 1024,
        ),
    )(xp, w_packed)

    # (bp, 4096) -> (B, 4, 4, 256): row-major split, free reshape.
    return out[:B].reshape(B, 4, 4, CORE_DIM)


def _reference(x, weights):
    """Pure-JAX port of EICLayer1.forward (torch.empty cells -> zeros)."""
    B = x.shape[0]
    x_ext = jnp.concatenate([x, x[:, :WRAP]], axis=1)
    grid = jnp.zeros((B, N_CELLS, CORE_DIM), jnp.float32)
    for k, s in enumerate(_START):
        chunk = x_ext[:, s:s + CORE_DIM]
        y = jnp.dot(chunk, weights[k].T, precision=jax.lax.Precision.HIGHEST)
        z = y - 0.5 * jnp.max(y, axis=1, keepdims=True)
        grid = grid.at[:, _CELL[k], :].set(1.0 / (1.0 + jnp.exp(-z)))
    return grid.reshape(B, 4, 4, CORE_DIM)


if __name__ == "__main__":
    key = jax.random.PRNGKey(0)
    k_x, k_w = jax.random.split(key)

    batch = 2
    x = jax.random.uniform(k_x, (batch, IN_FEATURES), dtype=jnp.float32)

    # Deterministic weights for the 9 active cores in nn.Linear (out, in) layout,
    # mimicking the uniform(-1/sqrt(in), 1/sqrt(in)) default init.
    bound = 1.0 / (CORE_DIM ** 0.5)
    weights = jax.random.uniform(
        k_w, (N_ACTIVE_CORES, CORE_DIM, CORE_DIM),
        minval=-bound, maxval=bound, dtype=jnp.float32)

    ref = _reference(x, weights)

    # Default f32 path (faithful to the PyTorch module).
    w_f32 = pack_weights(weights)
    out = eic_layer1(x, w_f32)
    jax.block_until_ready(out)
    assert out.shape == (batch, 4, 4, CORE_DIM)
    err = float(jnp.max(jnp.abs(out - ref)))
    assert err < 2e-3, "f32 max abs err %.3e" % err

    # Multi-tile / padded-batch path.
    batch2 = 300
    x2 = jax.random.uniform(jax.random.PRNGKey(1), (batch2, IN_FEATURES),
                            dtype=jnp.float32)
    out2 = eic_layer1(x2, w_f32)
    jax.block_until_ready(out2)
    assert out2.shape == (batch2, 4, 4, CORE_DIM)
    assert bool(jnp.allclose(out2, _reference(x2, weights), atol=2e-3, rtol=0.0))

    # Optional bf16-operand MXU path (v5e lever); slightly looser tolerance.
    out_bf16 = eic_layer1(x, pack_weights(weights, jnp.bfloat16))
    jax.block_until_ready(out_bf16)
    err_bf16 = float(jnp.max(jnp.abs(out_bf16 - ref)))
    assert err_bf16 < 5e-3, "bf16 max abs err %.3e" % err_bf16

    print("KERNEL_OK")
</pallas_src>

<mosaic_0001>
module attributes {stable_mosaic.version = 11 : i64} {
  func.func @_eic_kernel(%arg0: i32, %arg1: memref<8x1184xf32, #tpu.memory_space<vmem>>, %arg2: memref<9x256x256xf32, #tpu.memory_space<vmem>>, %arg3: memref<8x4096xf32, #tpu.memory_space<vmem>>) attributes {dimension_semantics = [#tpu.dimension_semantics<parallel>], iteration_bounds = array<i64: 2>, scalar_prefetch = 0 : i64, scratch_operands = 0 : i64, tpu.core_type = #tpu.core_type<tc>, window_params = [{transform_indices = @transform_0, window_bounds = array<i64: 8, 1184>}, {pipeline_mode = #tpu.pipeline_mode<synchronous>, transform_indices = @transform_1, window_bounds = array<i64: 9, 256, 256>}, {transform_indices = @transform_2, window_bounds = array<i64: 8, 4096>}]} {
    %cst = arith.constant 0.000000e+00 : f32
    %0 = vector.broadcast %cst : f32 to vector<8x256xf32>
    %c0 = arith.constant 0 : index
    %c768 = arith.constant 768 : index
    %1 = vector.load %arg3[%c0, %c768] : memref<8x4096xf32, #tpu.memory_space<vmem>>, vector<8x256xf32>
    tpu.vector_store %arg3[%c0, %c768], %0 {strides = array<i32>} : memref<8x4096xf32, #tpu.memory_space<vmem>>, vector<8x256xf32>,
    %cst_0 = arith.constant 0.000000e+00 : f32
    %2 = vector.broadcast %cst_0 : f32 to vector<8x256xf32>
    %c0_1 = arith.constant 0 : index
    %c1792 = arith.constant 1792 : index
    %3 = vector.load %arg3[%c0_1, %c1792] : memref<8x4096xf32, #tpu.memory_space<vmem>>, vector<8x256xf32>
    tpu.vector_store %arg3[%c0_1, %c1792], %2 {strides = array<i32>} : memref<8x4096xf32, #tpu.memory_space<vmem>>, vector<8x256xf32>,
    %cst_2 = arith.constant 0.000000e+00 : f32
    %4 = vector.broadcast %cst_2 : f32 to vector<8x1280xf32>
    %c0_3 = arith.constant 0 : index
    %c2816 = arith.constant 2816 : index
    %5 = vector.load %arg3[%c0_3, %c2816] : memref<8x4096xf32, #tpu.memory_space<vmem>>, vector<8x1280xf32>
    tpu.vector_store %arg3[%c0_3, %c2816], %4 {strides = array<i32>} : memref<8x4096xf32, #tpu.memory_space<vmem>>, vector<8x1280xf32>,
    %c0_4 = arith.constant 0 : index
    %c0_5 = arith.constant 0 : index
    %6 = vector.load %arg1[%c0_4, %c0_5] : memref<8x1184xf32, #tpu.memory_space<vmem>>, vector<8x256xf32>
    %c0_6 = arith.constant 0 : index
    %c0_7 = arith.constant 0 : index
    %c0_8 = arith.constant 0 : index
    %7 = vector.load %arg2[%c0_6, %c0_7, %c0_8] : memref<9x256x256xf32, #tpu.memory_space<vmem>>, vector<1x256x256xf32>
    %8 = vector.shape_cast %7 : vector<1x256x256xf32> to vector<256x256xf32>
    %cst_9 = arith.constant dense<0.000000e+00> : vector<8x256xf32>
    %9 = tpu.matmul %6, %8, %cst_9 {dimension_numbers = #tpu.dot_dimension_numbers<[1], [0], [0], [1], [0, 0, 1, 1], [], []>} : vector<8x256xf32>, vector<256x256xf32>, vector<8x256xf32> -> vector<8x256xf32>
    %cst_10 = arith.constant dense<0xFF800000> : vector<8xf32>
    %10 = vector.multi_reduction <maximumf>, %9, %cst_10 [1] : vector<8x256xf32> to vector<8xf32>
    %11 = vector.shape_cast %10 : vector<8xf32> to vector<8x1xf32>
    %cst_11 = arith.constant 5.000000e-01 : f32
    %12 = vector.broadcast %cst_11 : f32 to vector<8x1xf32>
    %13 = arith.mulf %12, %11 : vector<8x1xf32>
    %14 = vector.broadcast %13 : vector<8x1xf32> to vector<8x256xf32>
    %15 = arith.subf %9, %14 : vector<8x256xf32>
    %cst_12 = arith.constant 5.000000e-01 : f32
    %16 = vector.broadcast %cst_12 : f32 to vector<8x256xf32>
    %17 = arith.mulf %16, %15 : vector<8x256xf32>
    %18 = math.tanh %17 : vector<8x256xf32>
    %cst_13 = arith.constant 5.000000e-01 : f32
    %19 = vector.broadcast %cst_13 : f32 to vector<8x256xf32>
    %20 = arith.mulf %19, %18 : vector<8x256xf32>
    %cst_14 = arith.constant 5.000000e-01 : f32
    %21 = vector.broadcast %cst_14 : f32 to vector<8x256xf32>
    %22 = arith.addf %20, %21 : vector<8x256xf32>
    %c0_15 = arith.constant 0 : index
    %c0_16 = arith.constant 0 : index
    %23 = vector.load %arg3[%c0_15, %c0_16] : memref<8x4096xf32, #tpu.memory_space<vmem>>, vector<8x256xf32>
    tpu.vector_store %arg3[%c0_15, %c0_16], %22 {strides = array<i32>} : memref<8x4096xf32, #tpu.memory_space<vmem>>, vector<8x256xf32>,
    %c0_17 = arith.constant 0 : index
    %c256 = arith.constant 256 : index
    %24 = vector.load %arg1[%c0_17, %c256] : memref<8x1184xf32, #tpu.memory_space<vmem>>, vector<8x256xf32>
    %c1 = arith.constant 1 : index
    %c0_18 = arith.constant 0 : index
    %c0_19 = arith.constant 0 : index
    %25 = vector.load %arg2[%c1, %c0_18, %c0_19] : memref<9x256x256xf32, #tpu.memory_space<vmem>>, vector<1x256x256xf32>
    %26 = vector.shape_cast %25 : vector<1x256x256xf32> to vector<256x256xf32>
    %cst_20 = arith.constant dense<0.000000e+00> : vector<8x256xf32>
    %27 = tpu.matmul %24, %26, %cst_20 {dimension_numbers = #tpu.dot_dimension_numbers<[1], [0], [0], [1], [0, 0, 1, 1], [], []>} : vector<8x256xf32>, vector<256x256xf32>, vector<8x256xf32> -> vector<8x256xf32>
    %cst_21 = arith.constant dense<0xFF800000> : vector<8xf32>
    %28 = vector.multi_reduction <maximumf>, %27, %cst_21 [1] : vector<8x256xf32> to vector<8xf32>
    %29 = vector.shape_cast %28 : vector<8xf32> to vector<8x1xf32>
    %cst_22 = arith.constant 5.000000e-01 : f32
    %30 = vector.broadcast %cst_22 : f32 to vector<8x1xf32>
    %31 = arith.mulf %30, %29 : vector<8x1xf32>
    %32 = vector.broadcast %31 : vector<8x1xf32> to vector<8x256xf32>
    %33 = arith.subf %27, %32 : vector<8x256xf32>
    %cst_23 = arith.constant 5.000000e-01 : f32
    %34 = vector.broadcast %cst_23 : f32 to vector<8x256xf32>
    %35 = arith.mulf %34, %33 : vector<8x256xf32>
    %36 = math.tanh %35 : vector<8x256xf32>
    %cst_24 = arith.constant 5.000000e-01 : f32
    %37 = vector.broadcast %cst_24 : f32 to vector<8x256xf32>
    %38 = arith.mulf %37, %36 : vector<8x256xf32>
    %cst_25 = arith.constant 5.000000e-01 : f32
    %39 = vector.broadcast %cst_25 : f32 to vector<8x256xf32>
    %40 = arith.addf %38, %39 : vector<8x256xf32>
    %c0_26 = arith.constant 0 : index
    %c256_27 = arith.constant 256 : index
    %41 = vector.load %arg3[%c0_26, %c256_27] : memref<8x4096xf32, #tpu.memory_space<vmem>>, vector<8x256xf32>
    tpu.vector_store %arg3[%c0_26, %c256_27], %40 {strides = array<i32>} : memref<8x4096xf32, #tpu.memory_space<vmem>>, vector<8x256xf32>,
    %c0_28 = arith.constant 0 : index
    %c512 = arith.constant 512 : index
    %42 = vector.load %arg1[%c0_28, %c512] : memref<8x1184xf32, #tpu.memory_space<vmem>>, vector<8x256xf32>
    %c2 = arith.constant 2 : index
    %c0_29 = arith.constant 0 : index
    %c0_30 = arith.constant 0 : index
    %43 = vector.load %arg2[%c2, %c0_29, %c0_30] : memref<9x256x256xf32, #tpu.memory_space<vmem>>, vector<1x256x256xf32>
    %44 = vector.shape_cast %43 : vector<1x256x256xf32> to vector<256x256xf32>
    %cst_31 = arith.constant dense<0.000000e+00> : vector<8x256xf32>
    %45 = tpu.matmul %42, %44, %cst_31 {dimension_numbers = #tpu.dot_dimension_numbers<[1], [0], [0], [1], [0, 0, 1, 1], [], []>} : vector<8x256xf32>, vector<256x256xf32>, vector<8x256xf32> -> vector<8x256xf32>
    %cst_32 = arith.constant dense<0xFF800000> : vector<8xf32>
    %46 = vector.multi_reduction <maximumf>, %45, %cst_32 [1] : vector<8x256xf32> to vector<8xf32>
    %47 = vector.shape_cast %46 : vector<8xf32> to vector<8x1xf32>
    %cst_33 = arith.constant 5.000000e-01 : f32
    %48 = vector.broadcast %cst_33 : f32 to vector<8x1xf32>
    %49 = arith.mulf %48, %47 : vector<8x1xf32>
    %50 = vector.broadcast %49 : vector<8x1xf32> to vector<8x256xf32>
    %51 = arith.subf %45, %50 : vector<8x256xf32>
    %cst_34 = arith.constant 5.000000e-01 : f32
    %52 = vector.broadcast %cst_34 : f32 to vector<8x256xf32>
    %53 = arith.mulf %52, %51 : vector<8x256xf32>
    %54 = math.tanh %53 : vector<8x256xf32>
    %cst_35 = arith.constant 5.000000e-01 : f32
    %55 = vector.broadcast %cst_35 : f32 to vector<8x256xf32>
    %56 = arith.mulf %55, %54 : vector<8x256xf32>
    %cst_36 = arith.constant 5.000000e-01 : f32
    %57 = vector.broadcast %cst_36 : f32 to vector<8x256xf32>
    %58 = arith.addf %56, %57 : vector<8x256xf32>
    %c0_37 = arith.constant 0 : index
    %c512_38 = arith.constant 512 : index
    %59 = vector.load %arg3[%c0_37, %c512_38] : memref<8x4096xf32, #tpu.memory_space<vmem>>, vector<8x256xf32>
    tpu.vector_store %arg3[%c0_37, %c512_38], %58 {strides = array<i32>} : memref<8x4096xf32, #tpu.memory_space<vmem>>, vector<8x256xf32>,
    %c0_39 = arith.constant 0 : index
    %c768_40 = arith.constant 768 : index
    %60 = vector.load %arg1[%c0_39, %c768_40] : memref<8x1184xf32, #tpu.memory_space<vmem>>, vector<8x256xf32>
    %c3 = arith.constant 3 : index
    %c0_41 = arith.constant 0 : index
    %c0_42 = arith.constant 0 : index
    %61 = vector.load %arg2[%c3, %c0_41, %c0_42] : memref<9x256x256xf32, #tpu.memory_space<vmem>>, vector<1x256x256xf32>
    %62 = vector.shape_cast %61 : vector<1x256x256xf32> to vector<256x256xf32>
    %cst_43 = arith.constant dense<0.000000e+00> : vector<8x256xf32>
    %63 = tpu.matmul %60, %62, %cst_43 {dimension_numbers = #tpu.dot_dimension_numbers<[1], [0], [0], [1], [0, 0, 1, 1], [], []>} : vector<8x256xf32>, vector<256x256xf32>, vector<8x256xf32> -> vector<8x256xf32>
    %cst_44 = arith.constant dense<0xFF800000> : vector<8xf32>
    %64 = vector.multi_reduction <maximumf>, %63, %cst_44 [1] : vector<8x256xf32> to vector<8xf32>
    %65 = vector.shape_cast %64 : vector<8xf32> to vector<8x1xf32>
    %cst_45 = arith.constant 5.000000e-01 : f32
    %66 = vector.broadcast %cst_45 : f32 to vector<8x1xf32>
    %67 = arith.mulf %66, %65 : vector<8x1xf32>
    %68 = vector.broadcast %67 : vector<8x1xf32> to vector<8x256xf32>
    %69 = arith.subf %63, %68 : vector<8x256xf32>
    %cst_46 = arith.constant 5.000000e-01 : f32
    %70 = vector.broadcast %cst_46 : f32 to vector<8x256xf32>
    %71 = arith.mulf %70, %69 : vector<8x256xf32>
    %72 = math.tanh %71 : vector<8x256xf32>
    %cst_47 = arith.constant 5.000000e-01 : f32
    %73 = vector.broadcast %cst_47 : f32 to vector<8x256xf32>
    %74 = arith.mulf %73, %72 : vector<8x256xf32>
    %cst_48 = arith.constant 5.000000e-01 : f32
    %75 = vector.broadcast %cst_48 : f32 to vector<8x256xf32>
    %76 = arith.addf %74, %75 : vector<8x256xf32>
    %c0_49 = arith.constant 0 : index
    %c1024 = arith.constant 1024 : index
    %77 = vector.load %arg3[%c0_49, %c1024] : memref<8x4096xf32, #tpu.memory_space<vmem>>, vector<8x256xf32>
    tpu.vector_store %arg3[%c0_49, %c1024], %76 {strides = array<i32>} : memref<8x4096xf32, #tpu.memory_space<vmem>>, vector<8x256xf32>,
    %c0_50 = arith.constant 0 : index
    %c1024_51 = arith.constant 1024 : index
    %78 = vector.load %arg1[%c0_50, %c1024_51] : memref<8x1184xf32, #tpu.memory_space<vmem>>, vector<8x160xf32>
    %c4 = arith.constant 4 : index
    %c0_52 = arith.constant 0 : index
    %c0_53 = arith.constant 0 : index
    %79 = vector.load %arg2[%c4, %c0_52, %c0_53] : memref<9x256x256xf32, #tpu.memory_space<vmem>>, vector<1x160x256xf32>
    %80 = vector.shape_cast %79 : vector<1x160x256xf32> to vector<160x256xf32>
    %cst_54 = arith.constant dense<0.000000e+00> : vector<8x256xf32>
    %81 = tpu.matmul %78, %80, %cst_54 {dimension_numbers = #tpu.dot_dimension_numbers<[1], [0], [0], [1], [0, 0, 1, 1], [], []>} : vector<8x160xf32>, vector<160x256xf32>, vector<8x256xf32> -> vector<8x256xf32>
    %c0_55 = arith.constant 0 : index
    %c0_56 = arith.constant 0 : index
    %82 = vector.load %arg1[%c0_55, %c0_56] : memref<8x1184xf32, #tpu.memory_space<vmem>>, vector<8x96xf32>
    %c4_57 = arith.constant 4 : index
    %c160 = arith.constant 160 : index
    %c0_58 = arith.constant 0 : index
    %83 = vector.load %arg2[%c4_57, %c160, %c0_58] : memref<9x256x256xf32, #tpu.memory_space<vmem>>, vector<1x96x256xf32>
    %84 = vector.shape_cast %83 : vector<1x96x256xf32> to vector<96x256xf32>
    %cst_59 = arith.constant dense<0.000000e+00> : vector<8x256xf32>
    %85 = tpu.matmul %82, %84, %cst_59 {dimension_numbers = #tpu.dot_dimension_numbers<[1], [0], [0], [1], [0, 0, 1, 1], [], []>} : vector<8x96xf32>, vector<96x256xf32>, vector<8x256xf32> -> vector<8x256xf32>
    %86 = arith.addf %81, %85 : vector<8x256xf32>
    %cst_60 = arith.constant dense<0xFF800000> : vector<8xf32>
    %87 = vector.multi_reduction <maximumf>, %86, %cst_60 [1] : vector<8x256xf32> to vector<8xf32>
    %88 = vector.shape_cast %87 : vector<8xf32> to vector<8x1xf32>
    %cst_61 = arith.constant 5.000000e-01 : f32
    %89 = vector.broadcast %cst_61 : f32 to vector<8x1xf32>
    %90 = arith.mulf %89, %88 : vector<8x1xf32>
    %91 = vector.broadcast %90 : vector<8x1xf32> to vector<8x256xf32>
    %92 = arith.subf %86, %91 : vector<8x256xf32>
    %cst_62 = arith.constant 5.000000e-01 : f32
    %93 = vector.broadcast %cst_62 : f32 to vector<8x256xf32>
    %94 = arith.mulf %93, %92 : vector<8x256xf32>
    %95 = math.tanh %94 : vector<8x256xf32>
    %cst_63 = arith.constant 5.000000e-01 : f32
    %96 = vector.broadcast %cst_63 : f32 to vector<8x256xf32>
    %97 = arith.mulf %96, %95 : vector<8x256xf32>
    %cst_64 = arith.constant 5.000000e-01 : f32
    %98 = vector.broadcast %cst_64 : f32 to vector<8x256xf32>
    %99 = arith.addf %97, %98 : vector<8x256xf32>
    %c0_65 = arith.constant 0 : index
    %c1280 = arith.constant 1280 : index
    %100 = vector.load %arg3[%c0_65, %c1280] : memref<8x4096xf32, #tpu.memory_space<vmem>>, vector<8x256xf32>
    tpu.vector_store %arg3[%c0_65, %c1280], %99 {strides = array<i32>} : memref<8x4096xf32, #tpu.memory_space<vmem>>, vector<8x256xf32>,
    %c0_66 = arith.constant 0 : index
    %c96 = arith.constant 96 : index
    %101 = vector.load %arg1[%c0_66, %c96] : memref<8x1184xf32, #tpu.memory_space<vmem>>, vector<8x256xf32>
    %c5 = arith.constant 5 : index
    %c0_67 = arith.constant 0 : index
    %c0_68 = arith.constant 0 : index
    %102 = vector.load %arg2[%c5, %c0_67, %c0_68] : memref<9x256x256xf32, #tpu.memory_space<vmem>>, vector<1x256x256xf32>
    %103 = vector.shape_cast %102 : vector<1x256x256xf32> to vector<256x256xf32>
    %cst_69 = arith.constant dense<0.000000e+00> : vector<8x256xf32>
    %104 = tpu.matmul %101, %103, %cst_69 {dimension_numbers = #tpu.dot_dimension_numbers<[1], [0], [0], [1], [0, 0, 1, 1], [], []>} : vector<8x256xf32>, vector<256x256xf32>, vector<8x256xf32> -> vector<8x256xf32>
    %cst_70 = arith.constant dense<0xFF800000> : vector<8xf32>
    %105 = vector.multi_reduction <maximumf>, %104, %cst_70 [1] : vector<8x256xf32> to vector<8xf32>
    %106 = vector.shape_cast %105 : vector<8xf32> to vector<8x1xf32>
    %cst_71 = arith.constant 5.000000e-01 : f32
    %107 = vector.broadcast %cst_71 : f32 to vector<8x1xf32>
    %108 = arith.mulf %107, %106 : vector<8x1xf32>
    %109 = vector.broadcast %108 : vector<8x1xf32> to vector<8x256xf32>
    %110 = arith.subf %104, %109 : vector<8x256xf32>
    %cst_72 = arith.constant 5.000000e-01 : f32
    %111 = vector.broadcast %cst_72 : f32 to vector<8x256xf32>
    %112 = arith.mulf %111, %110 : vector<8x256xf32>
    %113 = math.tanh %112 : vector<8x256xf32>
    %cst_73 = arith.constant 5.000000e-01 : f32
    %114 = vector.broadcast %cst_73 : f32 to vector<8x256xf32>
    %115 = arith.mulf %114, %113 : vector<8x256xf32>
    %cst_74 = arith.constant 5.000000e-01 : f32
    %116 = vector.broadcast %cst_74 : f32 to vector<8x256xf32>
    %117 = arith.addf %115, %116 : vector<8x256xf32>
    %c0_75 = arith.constant 0 : index
    %c1536 = arith.constant 1536 : index
    %118 = vector.load %arg3[%c0_75, %c1536] : memref<8x4096xf32, #tpu.memory_space<vmem>>, vector<8x256xf32>
    tpu.vector_store %arg3[%c0_75, %c1536], %117 {strides = array<i32>} : memref<8x4096xf32, #tpu.memory_space<vmem>>, vector<8x256xf32>,
    %c0_76 = arith.constant 0 : index
    %c352 = arith.constant 352 : index
    %119 = vector.load %arg1[%c0_76, %c352] : memref<8x1184xf32, #tpu.memory_space<vmem>>, vector<8x256xf32>
    %c6 = arith.constant 6 : index
    %c0_77 = arith.constant 0 : index
    %c0_78 = arith.constant 0 : index
    %120 = vector.load %arg2[%c6, %c0_77, %c0_78] : memref<9x256x256xf32, #tpu.memory_space<vmem>>, vector<1x256x256xf32>
    %121 = vector.shape_cast %120 : vector<1x256x256xf32> to vector<256x256xf32>
    %cst_79 = arith.constant dense<0.000000e+00> : vector<8x256xf32>
    %122 = tpu.matmul %119, %121, %cst_79 {dimension_numbers = #tpu.dot_dimension_numbers<[1], [0], [0], [1], [0, 0, 1, 1], [], []>} : vector<8x256xf32>, vector<256x256xf32>, vector<8x256xf32> -> vector<8x256xf32>
    %cst_80 = arith.constant dense<0xFF800000> : vector<8xf32>
    %123 = vector.multi_reduction <maximumf>, %122, %cst_80 [1] : vector<8x256xf32> to vector<8xf32>
    %124 = vector.shape_cast %123 : vector<8xf32> to vector<8x1xf32>
    %cst_81 = arith.constant 5.000000e-01 : f32
    %125 = vector.broadcast %cst_81 : f32 to vector<8x1xf32>
    %126 = arith.mulf %125, %124 : vector<8x1xf32>
    %127 = vector.broadcast %126 : vector<8x1xf32> to vector<8x256xf32>
    %128 = arith.subf %122, %127 : vector<8x256xf32>
    %cst_82 = arith.constant 5.000000e-01 : f32
    %129 = vector.broadcast %cst_82 : f32 to vector<8x256xf32>
    %130 = arith.mulf %129, %128 : vector<8x256xf32>
    %131 = math.tanh %130 : vector<8x256xf32>
    %cst_83 = arith.constant 5.000000e-01 : f32
    %132 = vector.broadcast %cst_83 : f32 to vector<8x256xf32>
    %133 = arith.mulf %132, %131 : vector<8x256xf32>
    %cst_84 = arith.constant 5.000000e-01 : f32
    %134 = vector.broadcast %cst_84 : f32 to vector<8x256xf32>
    %135 = arith.addf %133, %134 : vector<8x256xf32>
    %c0_85 = arith.constant 0 : index
    %c2048 = arith.constant 2048 : index
    %136 = vector.load %arg3[%c0_85, %c2048] : memref<8x4096xf32, #tpu.memory_space<vmem>>, vector<8x256xf32>
    tpu.vector_store %arg3[%c0_85, %c2048], %135 {strides = array<i32>} : memref<8x4096xf32, #tpu.memory_space<vmem>>, vector<8x256xf32>,
    %c0_86 = arith.constant 0 : index
    %c608 = arith.constant 608 : index
    %137 = vector.load %arg1[%c0_86, %c608] : memref<8x1184xf32, #tpu.memory_space<vmem>>, vector<8x256xf32>
    %c7 = arith.constant 7 : index
    %c0_87 = arith.constant 0 : index
    %c0_88 = arith.constant 0 : index
    %138 = vector.load %arg2[%c7, %c0_87, %c0_88] : memref<9x256x256xf32, #tpu.memory_space<vmem>>, vector<1x256x256xf32>
    %139 = vector.shape_cast %138 : vector<1x256x256xf32> to vector<256x256xf32>
    %cst_89 = arith.constant dense<0.000000e+00> : vector<8x256xf32>
    %140 = tpu.matmul %137, %139, %cst_89 {dimension_numbers = #tpu.dot_dimension_numbers<[1], [0], [0], [1], [0, 0, 1, 1], [], []>} : vector<8x256xf32>, vector<256x256xf32>, vector<8x256xf32> -> vector<8x256xf32>
    %cst_90 = arith.constant dense<0xFF800000> : vector<8xf32>
    %141 = vector.multi_reduction <maximumf>, %140, %cst_90 [1] : vector<8x256xf32> to vector<8xf32>
    %142 = vector.shape_cast %141 : vector<8xf32> to vector<8x1xf32>
    %cst_91 = arith.constant 5.000000e-01 : f32
    %143 = vector.broadcast %cst_91 : f32 to vector<8x1xf32>
    %144 = arith.mulf %143, %142 : vector<8x1xf32>
    %145 = vector.broadcast %144 : vector<8x1xf32> to vector<8x256xf32>
    %146 = arith.subf %140, %145 : vector<8x256xf32>
    %cst_92 = arith.constant 5.000000e-01 : f32
    %147 = vector.broadcast %cst_92 : f32 to vector<8x256xf32>
    %148 = arith.mulf %147, %146 : vector<8x256xf32>
    %149 = math.tanh %148 : vector<8x256xf32>
    %cst_93 = arith.constant 5.000000e-01 : f32
    %150 = vector.broadcast %cst_93 : f32 to vector<8x256xf32>
    %151 = arith.mulf %150, %149 : vector<8x256xf32>
    %cst_94 = arith.constant 5.000000e-01 : f32
    %152 = vector.broadcast %cst_94 : f32 to vector<8x256xf32>
    %153 = arith.addf %151, %152 : vector<8x256xf32>
    %c0_95 = arith.constant 0 : index
    %c2304 = arith.constant 2304 : index
    %154 = vector.load %arg3[%c0_95, %c2304] : memref<8x4096xf32, #tpu.memory_space<vmem>>, vector<8x256xf32>
    tpu.vector_store %arg3[%c0_95, %c2304], %153 {strides = array<i32>} : memref<8x4096xf32, #tpu.memory_space<vmem>>, vector<8x256xf32>,
    %c0_96 = arith.constant 0 : index
    %c864 = arith.constant 864 : index
    %155 = vector.load %arg1[%c0_96, %c864] : memref<8x1184xf32, #tpu.memory_space<vmem>>, vector<8x256xf32>
    %c8 = arith.constant 8 : index
    %c0_97 = arith.constant 0 : index
    %c0_98 = arith.constant 0 : index
    %156 = vector.load %arg2[%c8, %c0_97, %c0_98] : memref<9x256x256xf32, #tpu.memory_space<vmem>>, vector<1x256x256xf32>
    %157 = vector.shape_cast %156 : vector<1x256x256xf32> to vector<256x256xf32>
    %cst_99 = arith.constant dense<0.000000e+00> : vector<8x256xf32>
    %158 = tpu.matmul %155, %157, %cst_99 {dimension_numbers = #tpu.dot_dimension_numbers<[1], [0], [0], [1], [0, 0, 1, 1], [], []>} : vector<8x256xf32>, vector<256x256xf32>, vector<8x256xf32> -> vector<8x256xf32>
    %cst_100 = arith.constant dense<0xFF800000> : vector<8xf32>
    %159 = vector.multi_reduction <maximumf>, %158, %cst_100 [1] : vector<8x256xf32> to vector<8xf32>
    %160 = vector.shape_cast %159 : vector<8xf32> to vector<8x1xf32>
    %cst_101 = arith.constant 5.000000e-01 : f32
    %161 = vector.broadcast %cst_101 : f32 to vector<8x1xf32>
    %162 = arith.mulf %161, %160 : vector<8x1xf32>
    %163 = vector.broadcast %162 : vector<8x1xf32> to vector<8x256xf32>
    %164 = arith.subf %158, %163 : vector<8x256xf32>
    %cst_102 = arith.constant 5.000000e-01 : f32
    %165 = vector.broadcast %cst_102 : f32 to vector<8x256xf32>
    %166 = arith.mulf %165, %164 : vector<8x256xf32>
    %167 = math.tanh %166 : vector<8x256xf32>
    %cst_103 = arith.constant 5.000000e-01 : f32
    %168 = vector.broadcast %cst_103 : f32 to vector<8x256xf32>
    %169 = arith.mulf %168, %167 : vector<8x256xf32>
    %cst_104 = arith.constant 5.000000e-01 : f32
    %170 = vector.broadcast %cst_104 : f32 to vector<8x256xf32>
    %171 = arith.addf %169, %170 : vector<8x256xf32>
    %c0_105 = arith.constant 0 : index
    %c2560 = arith.constant 2560 : index
    %172 = vector.load %arg3[%c0_105, %c2560] : memref<8x4096xf32, #tpu.memory_space<vmem>>, vector<8x256xf32>
    tpu.vector_store %arg3[%c0_105, %c2560], %171 {strides = array<i32>} : memref<8x4096xf32, #tpu.memory_space<vmem>>, vector<8x256xf32>,
    return
  }
  func.func @transform_0(%arg0: i32) -> (i32, i32) {
    %c0_i32 = arith.constant 0 : i32
    %c0_i32_0 = arith.constant 0 : i32
    return %arg0, %c0_i32 : i32, i32
  }
  func.func @transform_1(%arg0: i32) -> (i32, i32, i32) {
    %c0_i32 = arith.constant 0 : i32
    %c0_i32_0 = arith.constant 0 : i32
    %c0_i32_1 = arith.constant 0 : i32
    %c0_i32_2 = arith.constant 0 : i32
    return %c0_i32, %c0_i32_0, %c0_i32_1 : i32, i32, i32
  }
  func.func @transform_2(%arg0: i32) -> (i32, i32) {
    %c0_i32 = arith.constant 0 : i32
    %c0_i32_0 = arith.constant 0 : i32
    return %arg0, %c0_i32 : i32, i32
  }
}

</mosaic_0001>

<bundles_post_ra>
// kernel: eic_layer1.1
= control target key start
LH: loop header
LB: loop body
LE: loop exit
PB: predicated region body
PF: predicated region fallthrough
CT: control target
= control target key end

     0   :  { %7 = vsyncpa [#allocation3], 0  ;;  %s2504_s9 = smov 0   ;;  %s2774_s0 = inlined_call_operand.vmem [shape: f32[16,1184], index: 0, kind: input, shape index: {}]   ;;  %s2775_s1 = inlined_call_operand.hbm [shape: f32[9,256,256], index: 1, kind: input, shape index: {}]   ;;  %s2776_s2 = inlined_call_operand.vmem [shape: f32[16,4096], index: 2, kind: output, shape index: {}]  }
   0x1 LB: > { %s2510_s10 = sadd.s32 4294967295, %s2482_s9   ;;  %p1763_p0 = scmp.ge.s32.totalorder %s2482_s9, 1  ;;  %s2482_s9 = sphi %s2504_s9, %s13_s9  }
   0x2   : > { %p91_p1 = scmp.lt.s32.totalorder %s2482_s9, 3  ;;  %s2484_s11 = smov [#allocation2]  }
   0x3   : > { %s103_s12 = sshll.u32 %s2484_s11, 4  ;;  %p2777_p3 = scmp.eq.s32.totalorder %s2510_s10, 0  ;;  %s104_s12 = int_to_ptr.vmem [resolvable:$true] %s103_s12 }
   0x4   : > { %p2514_p2 = pnand %p1763_p0, %p91_p1  ;;  %s2444_s17 = scalar_lea.hbm %s2775_s1, 73728 }
   0x5   : > { %p2445_p6 = scmp.ne.s32.totalorder %s2775_s1, %s2444_s17  ;;  %p2451_p10 = scmp.lt.u32.totalorder %s2444_s17, %s2775_s1 }
   0x6   : > { %s2779_s13 = scalar_select %p2514_p2, 1, 0 }
   0x7   : > { %p2359_p4 = pneg %p2514_p2 }
   0x9   : > { %p2523_p5 = pnand %p2777_p3, %p2359_p4 }
   0xb   : > { %p2446_p7 = pneg %p2523_p5 }
   0xd   : > { %p2447_p8 = pnand %p2446_p7, %p2445_p6 }
   0xf   : > { %p2448_p9 = pneg %p2447_p8 }
  0x11   : > { %p2453_p11 = pnand %p2451_p10, %p2448_p9 }
  0x13   : > { %2456 = shalt.err (!%p2453_p11)
}
  0x14   : > { %s2457_s22 = scalar_lea.vmem %s104_s12, 73728  ;;  %p2465_p1 = scmp.lt.s32.totalorder %s104_s12, %s104_s12 }
  0x15   : > { %p2458_p12 = scmp.ne.s32.totalorder %s104_s12, %s2457_s22  ;;  %p2466_p4 = scmp.lt.s32.totalorder %s2457_s22, %s2457_s22 }
  0x17   : > { %p2460_p13 = pnand %p2458_p12, %p2446_p7  ;;  %p2467_p3 = por %p2466_p4, %p2465_p1 }
  0x19   : > { %p2461_p0 = pneg %p2460_p13 }
  0x1b   : > { %p2468_p2 = pnand %p2467_p3, %p2461_p0 }
  0x1d   : > { %2471 = shalt.err (!%p2468_p2)
}
  0x1e   : > { %s2485_s23 = smov 256   ;;  %s2486_s24 = smov 16  }
  0x1f   : > { %2362 = dma.hbm_to_vmem [thread:$0]  (!%p2523_p5), %s2775_s1, 73728, %s104_s12, [#allocation3], %s2485_s23, %s2485_s23, %s2486_s24  }
  0x20   : > { %p2781_p6 = scmp.ne.s32.totalorder %s2779_s13, 0 }
  0x21   : > { %p2782_p8 = scmp.eq.s32.totalorder (!%p2781_p6), %s2510_s10, 0 }
  0x22   : > { %127 = sbr.rel (%p2781_p6) target bundleno = 722 (0x2d2), region = 28 }
  0x29   : > { %2477 = dma.done.wait (%p2782_p8), [#allocation3], 73728   ;;  %p2783_p7 = pmov %p2782_p8 }
  0x2a   : > { %v176_v0 = vld [vmem:[#allocation2 + $0x8] sm:$0xff]  ;;  %v178_v1 = vld [vmem:[#allocation2 + $0x18] sm:$0xff]  ;;  %v175_v5 = vld [vmem:[#allocation2] sm:$0xff]  ;;  %p149_p2 = scmp.lt.s32.totalorder %s2510_s10, 1  ;;  %s2488_s7 = smov 32   ;;  %vm931_vm0 = vcmask 261120  }
  0x2b   : > { %2479 = vsyncadd (%p2783_p7), [#allocation3], 4294893568  ;;  %v330_v2 = vld [vmem:[#allocation2 + $0x208] sm:$0xff]  ;;  %v1776_v3 = vpack.c.bf16 %v178_v1, %v176_v0  ;;  %v332_v4 = vld [vmem:[#allocation2 + $0x218] sm:$0xff]  ;;  %vm856_vm1 = vcmask 785408  }
  0x2c   : > { %v177_v6 = vld [vmem:[#allocation2 + $0x10] sm:$0xff]  ;;  %v1840_v7 = vpack.c.bf16 %v332_v4, %v330_v2  ;;  %v329_v9 = vld [vmem:[#allocation2 + $0x200] sm:$0xff]  ;;  %v180_v11 = vld [vmem:[#allocation2 + $0x28] sm:$0xff]  ;;  %s2785_s10 = smov (!%p149_p2, %s2510_s10), 1 }
  0x2d   : > { %v1778_v8 = vpack.c.bf16 %v177_v6, %v175_v5  ;;  %v331_v10 = vld [vmem:[#allocation2 + $0x210] sm:$0xff]  ;;  %1777 = vmatprep.subr.bf16.mxu0 %v1776_v3  ;;  %v182_v13 = vld [vmem:[#allocation2 + $0x38] sm:$0xff]  ;;  %v334_v14 = vld [vmem:[#allocation2 + $0x228] sm:$0xff]  ;;  %s1775_s27 = sshll.u32 %s2785_s10, 8  ;;  %s2354_s3 = smul.u32 80, %s2785_s10 }
  0x2e   : > { %v1842_v12 = vpack.c.bf16 %v331_v10, %v329_v9  ;;  %v336_v15 = vld [vmem:[#allocation2 + $0x238] sm:$0xff]  ;;  %1841 = vmatprep.subr.bf16.mxu1 %v1840_v7  ;;  %v1780_v16 = vpack.c.bf16 %v182_v13, %v180_v11  ;;  %v179_v18 = vld [vmem:[#allocation2 + $0x20] sm:$0xff]  ;;  %v181_v19 = vld [vmem:[#allocation2 + $0x30] sm:$0xff]  ;;  %s2559_s30 = scalar_lea.vmem %s2776_s2, %s1775_s27 }
  0x2f   : > { %1779 = vmatpush1.bf16.msra.mxu0 %v1778_v8  ;;  %v1844_v17 = vpack.c.bf16 %v336_v15, %v334_v14  ;;  %v333_v20 = vld [vmem:[#allocation2 + $0x220] sm:$0xff]  ;;  %v1782_v21 = vpack.c.bf16 %v181_v19, %v179_v18  ;;  %v335_v22 = vld [vmem:[#allocation2 + $0x230] sm:$0xff]  ;;  %v184_v23 = vld [vmem:[#allocation2 + $0x48] sm:$0xff]  ;;  %s2593_s6 = scalar_lea.vmem %s2774_s0, %s2354_s3 }
  0x30   : > { %1843 = vmatpush1.bf16.msra.mxu1 %v1842_v12  ;;  %v186_v24 = vld [vmem:[#allocation2 + $0x58] sm:$0xff]  ;;  %1781 = vmatprep.subr.bf16.mxu0 %v1780_v16  ;;  %v1846_v25 = vpack.c.bf16 %v335_v22, %v333_v20  ;;  %v338_v27 = vld [vmem:[#allocation2 + $0x248] sm:$0xff]  ;;  %v183_v29 = vld [vmem:[#allocation2 + $0x40] sm:$0xff] }
  0x31   : > { %1845 = vmatprep.subr.bf16.mxu1 %v1844_v17  ;;  %v1784_v26 = vpack.c.bf16 %v186_v24, %v184_v23  ;;  %v340_v28 = vld [vmem:[#allocation2 + $0x258] sm:$0xff]  ;;  %v185_v31 = vld [vmem:[#allocation2 + $0x50] sm:$0xff]  ;;  %v337_v32 = vld [vmem:[#allocation2 + $0x240] sm:$0xff] }
  0x32   : > { %v1848_v30 = vpack.c.bf16 %v340_v28, %v338_v27  ;;  %v339_v33 = vld [vmem:[#allocation2 + $0x250] sm:$0xff]  ;;  %v1786_v34 = vpack.c.bf16 %v185_v31, %v183_v29  ;;  %v188_v35 = vld [vmem:[#allocation2 + $0x68] sm:$0xff]  ;;  %v190_v36 = vld [vmem:[#allocation2 + $0x78] sm:$0xff] }
  0x33   : > { %1783 = vmatpush1.bf16.msra.mxu0 %v1782_v21  ;;  %v342_v37 = vld [vmem:[#allocation2 + $0x268] sm:$0xff]  ;;  %v1850_v38 = vpack.c.bf16 %v339_v33, %v337_v32  ;;  %v1788_v39 = vpack.c.bf16 %v190_v36, %v188_v35  ;;  %v344_v40 = vld [vmem:[#allocation2 + $0x278] sm:$0xff]  ;;  %v187_v41 = vld [vmem:[#allocation2 + $0x60] sm:$0xff]  ;;  %v2487_v32 = vmov 0.0  }
  0x34   : > { %1847 = vmatpush1.bf16.msra.mxu1 %v1846_v25  ;;  %1785 = vmatprep.subr.bf16.mxu0 %v1784_v26  ;;  %v189_v42 = vld [vmem:[#allocation2 + $0x70] sm:$0xff]  ;;  %v1852_v43 = vpack.c.bf16 %v344_v40, %v342_v37  ;;  %v341_v44 = vld [vmem:[#allocation2 + $0x260] sm:$0xff]  ;;  %v192_v46 = vld [vmem:[#allocation2 + $0x88] sm:$0xff]  ;;  %159 = vst [vmem:[%s2559_s30 + $0x30] sm:$0xff] %v2487_v32 }
  0x35   : > { %1849 = vmatprep.subr.bf16.mxu1 %v1848_v30  ;;  %v343_v45 = vld [vmem:[#allocation2 + $0x270] sm:$0xff]  ;;  %v194_v47 = vld [vmem:[#allocation2 + $0x98] sm:$0xff]  ;;  %v346_v48 = vld [vmem:[#allocation2 + $0x288] sm:$0xff]  ;;  %v1790_v50 = vpack.c.bf16 %v189_v42, %v187_v41  ;;  %160 = vst [vmem:[%s2559_s30 + $0x38] sm:$0xff] %v2487_v32 }
  0x36   : > { %v348_v49 = vld [vmem:[#allocation2 + $0x298] sm:$0xff]  ;;  %v1854_v51 = vpack.c.bf16 %v343_v45, %v341_v44  ;;  %v1792_v52 = vpack.c.bf16 %v194_v47, %v192_v46  ;;  %v191_v53 = vld [vmem:[#allocation2 + $0x80] sm:$0xff]  ;;  %v193_v54 = vld [vmem:[#allocation2 + $0x90] sm:$0xff]  ;;  %161 = vst [vmem:[%s2559_s30 + $0x70] sm:$0xff] %v2487_v32 }
  0x37   : > { %1787 = vmatpush1.bf16.msra.mxu0 %v1786_v34  ;;  %v345_v55 = vld [vmem:[#allocation2 + $0x280] sm:$0xff]  ;;  %v1856_v56 = vpack.c.bf16 %v348_v49, %v346_v48  ;;  %v347_v57 = vld [vmem:[#allocation2 + $0x290] sm:$0xff]  ;;  %v196_v58 = vld [vmem:[#allocation2 + $0xa8] sm:$0xff]  ;;  %v1794_v62 = vpack.c.bf16 %v193_v54, %v191_v53  ;;  %162 = vst [vmem:[%s2559_s30 + $0x78] sm:$0xff] %v2487_v32 }
  0x38   : > { %1851 = vmatpush1.bf16.msra.mxu1 %v1850_v38  ;;  %1789 = vmatprep.subr.bf16.mxu0 %v1788_v39  ;;  %v198_v59 = vld [vmem:[#allocation2 + $0xb8] sm:$0xff]  ;;  %v350_v60 = vld [vmem:[#allocation2 + $0x2a8] sm:$0xff]  ;;  %v1858_v63 = vpack.c.bf16 %v347_v57, %v345_v55  ;;  %v195_v1 = vld [vmem:[#allocation2 + $0xa0] sm:$0xff]  ;;  %163 = vst [vmem:[%s2559_s30 + $0xb0] sm:$0xff] %v2487_v32 }
  0x39   : > { %1853 = vmatprep.subr.bf16.mxu1 %v1852_v43  ;;  %v352_v61 = vld [vmem:[#allocation2 + $0x2b8] sm:$0xff]  ;;  %v1796_v0 = vpack.c.bf16 %v198_v59, %v196_v58  ;;  %v197_v2 = vld [vmem:[#allocation2 + $0xb0] sm:$0xff]  ;;  %v349_v3 = vld [vmem:[#allocation2 + $0x2a0] sm:$0xff]  ;;  %164 = vst [vmem:[%s2559_s30 + $0xb8] sm:$0xff] %v2487_v32 }
  0x3a   : > { %v1860_v4 = vpack.c.bf16 %v352_v61, %v350_v60  ;;  %v351_v5 = vld [vmem:[#allocation2 + $0x2b0] sm:$0xff]  ;;  %v200_v6 = vld [vmem:[#allocation2 + $0xc8] sm:$0xff]  ;;  %v202_v7 = vld [vmem:[#allocation2 + $0xd8] sm:$0xff]  ;;  %v1798_v10 = vpack.c.bf16 %v197_v2, %v195_v1  ;;  %165 = vst [vmem:[%s2559_s30 + $0xc0] sm:$0xff] %v2487_v32 }
  0x3b   : > { %1791 = vmatpush1.bf16.msra.mxu0 %v1790_v50  ;;  %v354_v8 = vld [vmem:[#allocation2 + $0x2c8] sm:$0xff]  ;;  %v356_v9 = vld [vmem:[#allocation2 + $0x2d8] sm:$0xff]  ;;  %v1862_v11 = vpack.c.bf16 %v351_v5, %v349_v3  ;;  %v1800_v12 = vpack.c.bf16 %v202_v7, %v200_v6  ;;  %v199_v13 = vld [vmem:[#allocation2 + $0xc0] sm:$0xff]  ;;  %166 = vst [vmem:[%s2559_s30 + $0xc8] sm:$0xff] %v2487_v32 }
  0x3c   : > { %1855 = vmatpush1.bf16.msra.mxu1 %v1854_v51  ;;  %1793 = vmatprep.subr.bf16.mxu0 %v1792_v52  ;;  %v201_v14 = vld [vmem:[#allocation2 + $0xd0] sm:$0xff]  ;;  %v353_v15 = vld [vmem:[#allocation2 + $0x2c0] sm:$0xff]  ;;  %v1864_v16 = vpack.c.bf16 %v356_v9, %v354_v8  ;;  %v204_v18 = vld [vmem:[#allocation2 + $0xe8] sm:$0xff]  ;;  %167 = vst [vmem:[%s2559_s30 + $0xd0] sm:$0xff] %v2487_v32 }
  0x3d   : > { %1857 = vmatprep.subr.bf16.mxu1 %v1856_v56  ;;  %v355_v17 = vld [vmem:[#allocation2 + $0x2d0] sm:$0xff]  ;;  %v206_v19 = vld [vmem:[#allocation2 + $0xf8] sm:$0xff]  ;;  %v358_v20 = vld [vmem:[#allocation2 + $0x2e8] sm:$0xff]  ;;  %v1802_v22 = vpack.c.bf16 %v201_v14, %v199_v13  ;;  %168 = vst [vmem:[%s2559_s30 + $0xd8] sm:$0xff] %v2487_v32 }
  0x3e   : > { %v360_v21 = vld [vmem:[#allocation2 + $0x2f8] sm:$0xff]  ;;  %v1866_v23 = vpack.c.bf16 %v355_v17, %v353_v15  ;;  %v1804_v24 = vpack.c.bf16 %v206_v19, %v204_v18  ;;  %v203_v25 = vld [vmem:[#allocation2 + $0xe0] sm:$0xff]  ;;  %v205_v26 = vld [vmem:[#allocation2 + $0xf0] sm:$0xff]  ;;  %169 = vst [vmem:[%s2559_s30 + $0xe0] sm:$0xff] %v2487_v32 }
  0x3f   : > { %1795 = vmatpush1.bf16.msra.mxu0 %v1794_v62  ;;  %v357_v27 = vld [vmem:[#allocation2 + $0x2e0] sm:$0xff]  ;;  %v1868_v28 = vpack.c.bf16 %v360_v21, %v358_v20  ;;  %v359_v29 = vld [vmem:[#allocation2 + $0x2f0] sm:$0xff]  ;;  %v208_v30 = vld [vmem:[#allocation2 + $0x108] sm:$0xff]  ;;  %170 = vst [vmem:[%s2559_s30 + $0xe8] sm:$0xff] %v2487_v32  ;;  %v1806_v35 = vpack.c.bf16 %v205_v26, %v203_v25 }
  0x40   : > { %1859 = vmatpush1.bf16.msra.mxu1 %v1858_v63  ;;  %1797 = vmatprep.subr.bf16.mxu0 %v1796_v0  ;;  %v210_v31 = vld [vmem:[#allocation2 + $0x118] sm:$0xff]  ;;  %171 = vst [vmem:[%s2559_s30 + $0xf0] sm:$0xff] %v2487_v32  ;;  %172 = vst [vmem:[%s2559_s30 + $0xf8] sm:$0xff] %v2487_v32  ;;  %v362_v33 = vld [vmem:[#allocation2 + $0x308] sm:$0xff]  ;;  %v1870_v36 = vpack.c.bf16 %v359_v29, %v357_v27 }
  0x41   : > { %1861 = vmatprep.subr.bf16.mxu1 %v1860_v4  ;;  %v364_v34 = vld [vmem:[#allocation2 + $0x318] sm:$0xff]  ;;  %v1808_v37 = vpack.c.bf16 %v210_v31, %v208_v30  ;;  %v207_v38 = vld [vmem:[#allocation2 + $0x100] sm:$0xff]  ;;  %v209_v39 = vld [vmem:[#allocation2 + $0x110] sm:$0xff] }
  0x42   : > { %v361_v40 = vld [vmem:[#allocation2 + $0x300] sm:$0xff]  ;;  %v1872_v41 = vpack.c.bf16 %v364_v34, %v362_v33  ;;  %v363_v42 = vld [vmem:[#allocation2 + $0x310] sm:$0xff]  ;;  %v212_v43 = vld [vmem:[#allocation2 + $0x128] sm:$0xff]  ;;  %v1810_v47 = vpack.c.bf16 %v209_v39, %v207_v38 }
  0x43   : > { %1799 = vmatpush1.bf16.msra.mxu0 %v1798_v10  ;;  %v214_v44 = vld [vmem:[#allocation2 + $0x138] sm:$0xff]  ;;  %v366_v45 = vld [vmem:[#allocation2 + $0x328] sm:$0xff]  ;;  %v1874_v48 = vpack.c.bf16 %v363_v42, %v361_v40  ;;  %v211_v50 = vld [vmem:[#allocation2 + $0x120] sm:$0xff] }
  0x44   : > { %1863 = vmatpush1.bf16.msra.mxu1 %v1862_v11  ;;  %1801 = vmatprep.subr.bf16.mxu0 %v1800_v12  ;;  %v368_v46 = vld [vmem:[#allocation2 + $0x338] sm:$0xff]  ;;  %v1812_v49 = vpack.c.bf16 %v214_v44, %v212_v43  ;;  %v213_v51 = vld [vmem:[#allocation2 + $0x130] sm:$0xff]  ;;  %v365_v52 = vld [vmem:[#allocation2 + $0x320] sm:$0xff] }
  0x45   : > { %1865 = vmatprep.subr.bf16.mxu1 %v1864_v16  ;;  %v1876_v53 = vpack.c.bf16 %v368_v46, %v366_v45  ;;  %v367_v54 = vld [vmem:[#allocation2 + $0x330] sm:$0xff]  ;;  %v216_v55 = vld [vmem:[#allocation2 + $0x148] sm:$0xff]  ;;  %v218_v56 = vld [vmem:[#allocation2 + $0x158] sm:$0xff]  ;;  %v1814_v59 = vpack.c.bf16 %v213_v51, %v211_v50 }
  0x46   : > { %v370_v57 = vld [vmem:[#allocation2 + $0x348] sm:$0xff]  ;;  %v372_v58 = vld [vmem:[#allocation2 + $0x358] sm:$0xff]  ;;  %v1878_v60 = vpack.c.bf16 %v367_v54, %v365_v52  ;;  %v1816_v61 = vpack.c.bf16 %v218_v56, %v216_v55  ;;  %v215_v62 = vld [vmem:[#allocation2 + $0x140] sm:$0xff] }
  0x47   : > { %1803 = vmatpush1.bf16.msra.mxu0 %v1802_v22  ;;  %v217_v63 = vld [vmem:[#allocation2 + $0x150] sm:$0xff]  ;;  %v369_v0 = vld [vmem:[#allocation2 + $0x340] sm:$0xff]  ;;  %v1880_v1 = vpack.c.bf16 %v372_v58, %v370_v57  ;;  %v220_v3 = vld [vmem:[#allocation2 + $0x168] sm:$0xff] }
  0x48   : > { %1867 = vmatpush1.bf16.msra.mxu1 %v1866_v23  ;;  %1805 = vmatprep.subr.bf16.mxu0 %v1804_v24  ;;  %v371_v2 = vld [vmem:[#allocation2 + $0x350] sm:$0xff]  ;;  %v222_v4 = vld [vmem:[#allocation2 + $0x178] sm:$0xff]  ;;  %v374_v5 = vld [vmem:[#allocation2 + $0x368] sm:$0xff]  ;;  %v1818_v7 = vpack.c.bf16 %v217_v63, %v215_v62 }
  0x49   : > { %1869 = vmatprep.subr.bf16.mxu1 %v1868_v28  ;;  %v376_v6 = vld [vmem:[#allocation2 + $0x378] sm:$0xff]  ;;  %v219_v8 = vld [vmem:[#allocation2 + $0x160] sm:$0xff]  ;;  %v221_v9 = vld [vmem:[#allocation2 + $0x170] sm:$0xff]  ;;  %v1882_v11 = vpack.c.bf16 %v371_v2, %v369_v0  ;;  %v1820_v12 = vpack.c.bf16 %v222_v4, %v220_v3 }
  0x4a   : > { %v373_v10 = vld [vmem:[#allocation2 + $0x360] sm:$0xff]  ;;  %v375_v13 = vld [vmem:[#allocation2 + $0x370] sm:$0xff]  ;;  %v224_v14 = vld [vmem:[#allocation2 + $0x188] sm:$0xff]  ;;  %v1884_v16 = vpack.c.bf16 %v376_v6, %v374_v5  ;;  %v1822_v23 = vpack.c.bf16 %v221_v9, %v219_v8 }
  0x4b   : > { %1807 = vmatpush1.bf16.msra.mxu0 %v1806_v35  ;;  %v226_v15 = vld [vmem:[#allocation2 + $0x198] sm:$0xff]  ;;  %v378_v17 = vld [vmem:[#allocation2 + $0x388] sm:$0xff]  ;;  %v2600_v21 = vld [vmem:[%s2593_s6] sm:$0xff]  ;;  %v1886_v26 = vpack.c.bf16 %v375_v13, %v373_v10 }
  0x4c   : > { %1871 = vmatpush1.bf16.msra.mxu1 %v1870_v36  ;;  %1809 = vmatprep.subr.bf16.mxu0 %v1808_v37  ;;  %v380_v18 = vld [vmem:[#allocation2 + $0x398] sm:$0xff]  ;;  %v174_v19 = vld [vmem:[%s2593_s6 + $0x8] sm:$0xff]  ;;  %v2603_v22 = vld [vmem:[%s2593_s6 + $0x10] sm:$0xff]  ;;  %v1824_v27 = vpack.c.bf16 %v226_v15, %v224_v14 }
  0x4d   : > { %1873 = vmatprep.subr.bf16.mxu1 %v1872_v41  ;;  %303 = vmatprep.mubr.f32.mxu0 %v174_v19  ;;  %v2597_v20 = vld [vmem:[%s2593_s6 + $0x18] sm:$0xff]  ;;  %v2378_v24 = vpack.i.bf16 %v2603_v22, %v174_v19  ;;  %v2388_v25 = vpack.i.bf16 %v2603_v22, %v2600_v21  ;;  %v223_v28 = vld [vmem:[#allocation2 + $0x180] sm:$0xff]  ;;  %v225_v29 = vld [vmem:[#allocation2 + $0x190] sm:$0xff]  ;;  %v1888_v31 = vpack.c.bf16 %v380_v18, %v378_v17 }
  0x4e   : > { %457 = vmatprep.mubr.f32.mxu1 %v2597_v20  ;;  %v377_v30 = vld [vmem:[#allocation2 + $0x380] sm:$0xff]  ;;  %v379_v33 = vld [vmem:[#allocation2 + $0x390] sm:$0xff]  ;;  %v228_v34 = vld [vmem:[#allocation2 + $0x1a8] sm:$0xff]  ;;  %v1826_v38 = vpack.c.bf16 %v225_v29, %v223_v28 }
  0x4f   : > { %1811 = vmatpush1.bf16.msra.mxu0 %v1810_v47  ;;  %v230_v35 = vld [vmem:[#allocation2 + $0x1b8] sm:$0xff]  ;;  %2379 = vrot.lane.b32.xlu0 %v2378_v24, %s2488_s7  ;;  %v382_v36 = vld [vmem:[#allocation2 + $0x3a8] sm:$0xff]  ;;  %v1890_v39 = vpack.c.bf16 %v379_v33, %v377_v30  ;;  %v227_v41 = vld [vmem:[#allocation2 + $0x1a0] sm:$0xff] }
  0x50   : > { %1875 = vmatpush1.bf16.msra.mxu1 %v1874_v48  ;;  %1813 = vmatprep.subr.bf16.mxu0 %v1812_v49  ;;  %v384_v37 = vld [vmem:[#allocation2 + $0x3b8] sm:$0xff]  ;;  %v1828_v40 = vpack.c.bf16 %v230_v35, %v228_v34  ;;  %v229_v42 = vld [vmem:[#allocation2 + $0x1b0] sm:$0xff]  ;;  %v381_v43 = vld [vmem:[#allocation2 + $0x3a0] sm:$0xff] }
  0x51   : > { %1877 = vmatprep.subr.bf16.mxu1 %v1876_v53  ;;  %2389 = vrot.lane.b32.xlu1 %v2388_v25, %s2488_s7  ;;  %v1892_v44 = vpack.c.bf16 %v384_v37, %v382_v36  ;;  %v383_v45 = vld [vmem:[#allocation2 + $0x3b0] sm:$0xff]  ;;  %v232_v46 = vld [vmem:[#allocation2 + $0x1c8] sm:$0xff]  ;;  %v234_v47 = vld [vmem:[#allocation2 + $0x1d8] sm:$0xff]  ;;  %v1830_v50 = vpack.c.bf16 %v229_v42, %v227_v41 }
  0x52   : > { %v386_v48 = vld [vmem:[#allocation2 + $0x3c8] sm:$0xff]  ;;  %v388_v49 = vld [vmem:[#allocation2 + $0x3d8] sm:$0xff]  ;;  %v1894_v51 = vpack.c.bf16 %v383_v45, %v381_v43  ;;  %v1832_v52 = vpack.c.bf16 %v234_v47, %v232_v46  ;;  %v231_v53 = vld [vmem:[#allocation2 + $0x1c0] sm:$0xff] }
  0x53   : > { %1815 = vmatpush1.bf16.msra.mxu0 %v1814_v59  ;;  %v233_v54 = vld [vmem:[#allocation2 + $0x1d0] sm:$0xff]  ;;  %v385_v55 = vld [vmem:[#allocation2 + $0x3c0] sm:$0xff]  ;;  %v1896_v56 = vpack.c.bf16 %v388_v49, %v386_v48  ;;  %v236_v58 = vld [vmem:[#allocation2 + $0x1e8] sm:$0xff] }
  0x54   : > { %1879 = vmatpush1.bf16.msra.mxu1 %v1878_v60  ;;  %1817 = vmatprep.subr.bf16.mxu0 %v1816_v61  ;;  %v387_v57 = vld [vmem:[#allocation2 + $0x3d0] sm:$0xff]  ;;  %v238_v59 = vld [vmem:[#allocation2 + $0x1f8] sm:$0xff]  ;;  %v390_v60 = vld [vmem:[#allocation2 + $0x3e8] sm:$0xff]  ;;  %v1834_v62 = vpack.c.bf16 %v233_v54, %v231_v53 }
  0x55   : > { %1881 = vmatprep.subr.bf16.mxu1 %v1880_v1  ;;  %v392_v61 = vld [vmem:[#allocation2 + $0x3f8] sm:$0xff]  ;;  %v1898_v63 = vpack.c.bf16 %v387_v57, %v385_v55  ;;  %v1836_v0 = vpack.c.bf16 %v238_v59, %v236_v58  ;;  %v235_v1 = vld [vmem:[#allocation2 + $0x1e0] sm:$0xff]  ;;  %v237_v2 = vld [vmem:[#allocation2 + $0x1f0] sm:$0xff] }
  0x56   : > { %v389_v3 = vld [vmem:[#allocation2 + $0x3e0] sm:$0xff]  ;;  %v1900_v4 = vpack.c.bf16 %v392_v61, %v390_v60  ;;  %v391_v5 = vld [vmem:[#allocation2 + $0x3f0] sm:$0xff]  ;;  %v484_v6 = vld [vmem:[#allocation2 + $0x408] sm:$0xff]  ;;  %v1838_v10 = vpack.c.bf16 %v237_v2, %v235_v1 }
  0x57   : > { %1819 = vmatpush1.bf16.msra.mxu0 %v1818_v7  ;;  %v486_v7 = vld [vmem:[#allocation2 + $0x418] sm:$0xff]  ;;  %v638_v8 = vld [vmem:[#allocation2 + $0x608] sm:$0xff]  ;;  %v483_v13 = vld [vmem:[#allocation2 + $0x400] sm:$0xff] }
  0x58   : > { %1883 = vmatpush1.bf16.msra.mxu1 %v1882_v11  ;;  %1821 = vmatprep.subr.bf16.mxu0 %v1820_v12  ;;  %v640_v9 = vld [vmem:[#allocation2 + $0x618] sm:$0xff]  ;;  %v1902_v11 = vpack.c.bf16 %v391_v5, %v389_v3  ;;  %v1904_v12 = vpack.c.bf16 %v486_v7, %v484_v6  ;;  %v485_v14 = vld [vmem:[#allocation2 + $0x410] sm:$0xff]  ;;  %v637_v15 = vld [vmem:[#allocation2 + $0x600] sm:$0xff] }
  0x59   : > { %1885 = vmatprep.subr.bf16.mxu1 %v1884_v16  ;;  %v1968_v16 = vpack.c.bf16 %v640_v9, %v638_v8  ;;  %v639_v17 = vld [vmem:[#allocation2 + $0x610] sm:$0xff]  ;;  %v488_v18 = vld [vmem:[#allocation2 + $0x428] sm:$0xff]  ;;  %v490_v19 = vld [vmem:[#allocation2 + $0x438] sm:$0xff]  ;;  %v1906_v25 = vpack.c.bf16 %v485_v14, %v483_v13 }
  0x5a   : > { %v644_v24 = vld [vmem:[#allocation2 + $0x638] sm:$0xff]  ;;  %v487_v28 = vld [vmem:[#allocation2 + $0x420] sm:$0xff]  ;;  %v489_v29 = vld [vmem:[#allocation2 + $0x430] sm:$0xff] }
  0x5b   : > { %1823 = vmatpush1.bf16.msra.mxu0 %v1822_v23  ;;  %v642_v23 = vld [vmem:[#allocation2 + $0x628] sm:$0xff]  ;;  %v641_v30 = vld [vmem:[#allocation2 + $0x620] sm:$0xff]  ;;  %v643_v33 = vld [vmem:[#allocation2 + $0x630] sm:$0xff] }
  0x5c   : > { %1887 = vmatpush1.bf16.msra.mxu1 %v1886_v26  ;;  %1825 = vmatprep.subr.bf16.mxu0 %v1824_v27  ;;  %v1970_v26 = vpack.c.bf16 %v639_v17, %v637_v15  ;;  %v1908_v27 = vpack.c.bf16 %v490_v19, %v488_v18  ;;  %v492_v34 = vld [vmem:[#allocation2 + $0x448] sm:$0xff]  ;;  %v494_v35 = vld [vmem:[#allocation2 + $0x458] sm:$0xff]  ;;  %v491_v41 = vld [vmem:[#allocation2 + $0x440] sm:$0xff] }
  0x5d   : > { %1889 = vmatprep.subr.bf16.mxu1 %v1888_v31  ;;  %v1972_v31 = vpack.c.bf16 %v644_v24, %v642_v23  ;;  %v646_v36 = vld [vmem:[#allocation2 + $0x648] sm:$0xff]  ;;  %v648_v37 = vld [vmem:[#allocation2 + $0x658] sm:$0xff]  ;;  %v493_v42 = vld [vmem:[#allocation2 + $0x450] sm:$0xff] }
  0x5e   : > { %v645_v43 = vld [vmem:[#allocation2 + $0x640] sm:$0xff]  ;;  %v647_v45 = vld [vmem:[#allocation2 + $0x650] sm:$0xff]  ;;  %v496_v46 = vld [vmem:[#allocation2 + $0x468] sm:$0xff] }
  0x5f   : > { %1827 = vmatpush1.bf16.msra.mxu0 %v1826_v38  ;;  %v1910_v38 = vpack.c.bf16 %v489_v29, %v487_v28  ;;  %v498_v47 = vld [vmem:[#allocation2 + $0x478] sm:$0xff]  ;;  %v650_v48 = vld [vmem:[#allocation2 + $0x668] sm:$0xff]  ;;  %v497_v53 = vld [vmem:[#allocation2 + $0x470] sm:$0xff] }
  0x60   : > { %1891 = vmatpush1.bf16.msra.mxu1 %v1890_v39  ;;  %1829 = vmatprep.subr.bf16.mxu0 %v1828_v40  ;;  %v1974_v39 = vpack.c.bf16 %v643_v33, %v641_v30  ;;  %v1912_v40 = vpack.c.bf16 %v494_v35, %v492_v34  ;;  %v652_v49 = vld [vmem:[#allocation2 + $0x678] sm:$0xff]  ;;  %v649_v54 = vld [vmem:[#allocation2 + $0x660] sm:$0xff]  ;;  %v500_v57 = vld [vmem:[#allocation2 + $0x488] sm:$0xff] }
  0x61   : > { %1893 = vmatprep.subr.bf16.mxu1 %v1892_v44  ;;  %v1976_v44 = vpack.c.bf16 %v648_v37, %v646_v36  ;;  %v1980_v55 = vpack.c.bf16 %v652_v49, %v650_v48  ;;  %v502_v58 = vld [vmem:[#allocation2 + $0x498] sm:$0xff]  ;;  %v654_v59 = vld [vmem:[#allocation2 + $0x688] sm:$0xff]  ;;  %v501_v1 = vld [vmem:[#allocation2 + $0x490] sm:$0xff] }
  0x62   : > { %v656_v60 = vld [vmem:[#allocation2 + $0x698] sm:$0xff]  ;;  %v653_v2 = vld [vmem:[#allocation2 + $0x680] sm:$0xff]  ;;  %v655_v5 = vld [vmem:[#allocation2 + $0x690] sm:$0xff] }
  0x63   : > { %1831 = vmatpush1.bf16.msra.mxu0 %v1830_v50  ;;  %v1914_v50 = vpack.c.bf16 %v493_v42, %v491_v41  ;;  %v2614_v3 = vld [vmem:[%s2593_s6 + $0x20] sm:$0xff]  ;;  %v504_v6 = vld [vmem:[#allocation2 + $0x4a8] sm:$0xff]  ;;  %v506_v7 = vld [vmem:[#allocation2 + $0x4b8] sm:$0xff] }
  0x64   : > { %1895 = vmatpush1.bf16.msra.mxu1 %v1894_v51  ;;  %1833 = vmatprep.subr.bf16.mxu0 %v1832_v52  ;;  %v1916_v51 = vpack.c.bf16 %v498_v47, %v496_v46  ;;  %v495_v52 = vld [vmem:[#allocation2 + $0x460] sm:$0xff]  ;;  %v2383_v8 = vpack.i.bf16 %v2614_v3, %v2597_v20  ;;  %v658_v9 = vld [vmem:[#allocation2 + $0x6a8] sm:$0xff]  ;;  %v1924_v13 = vpack.c.bf16 %v506_v7, %v504_v6  ;;  %v505_v15 = vld [vmem:[#allocation2 + $0x4b0] sm:$0xff] }
  0x65   : > { %1897 = vmatprep.subr.bf16.mxu1 %v1896_v56  ;;  %v651_v56 = vld [vmem:[#allocation2 + $0x670] sm:$0xff]  ;;  %v1918_v61 = vpack.c.bf16 %v497_v53, %v495_v52  ;;  %v503_v14 = vld [vmem:[#allocation2 + $0x4a0] sm:$0xff]  ;;  %v508_v19 = vld [vmem:[#allocation2 + $0x4c8] sm:$0xff] }
  0x66   : > { %2384 = vrot.lane.b32.xlu0 %v2383_v8, %s2488_s7  ;;  %v659_v18 = vld [vmem:[#allocation2 + $0x6b0] sm:$0xff]  ;;  %v510_v23 = vld [vmem:[#allocation2 + $0x4d8] sm:$0xff]  ;;  %v662_v24 = vld [vmem:[#allocation2 + $0x6c8] sm:$0xff] }
  0x67   : > { %1835 = vmatpush1.bf16.msra.mxu0 %v1834_v62  ;;  %v499_v62 = vld [vmem:[#allocation2 + $0x480] sm:$0xff]  ;;  %v664_v20 = vld [vmem:[#allocation2 + $0x6d8] sm:$0xff]  ;;  %v1928_v28 = vpack.c.bf16 %v510_v23, %v508_v19  ;;  %v509_v29 = vld [vmem:[#allocation2 + $0x4d0] sm:$0xff] }
  0x68   : > { %1899 = vmatpush1.bf16.msra.mxu1 %v1898_v63  ;;  %1837 = vmatprep.subr.bf16.mxu0 %v1836_v0  ;;  %v1982_v63 = vpack.c.bf16 %v651_v56, %v649_v54  ;;  %v1920_v0 = vpack.c.bf16 %v502_v58, %v500_v57  ;;  %v661_v30 = vld [vmem:[#allocation2 + $0x6c0] sm:$0xff]  ;;  %v1992_v33 = vpack.c.bf16 %v664_v20, %v662_v24  ;;  %v512_v34 = vld [vmem:[#allocation2 + $0x4e8] sm:$0xff]  ;;  %v514_v35 = vld [vmem:[#allocation2 + $0x4f8] sm:$0xff] }
  0x69   : > { %1901 = vmatprep.subr.bf16.mxu1 %v1900_v4  ;;  %v1984_v4 = vpack.c.bf16 %v656_v60, %v654_v59  ;;  %v666_v36 = vld [vmem:[#allocation2 + $0x6e8] sm:$0xff]  ;;  %v668_v37 = vld [vmem:[#allocation2 + $0x6f8] sm:$0xff]  ;;  %v511_v41 = vld [vmem:[#allocation2 + $0x4e0] sm:$0xff] }
  0x6a   : > { %v2624_v46 = vld [vmem:[%s2593_s6 + $0x30] sm:$0xff]  ;;  %v1996_v47 = vpack.c.bf16 %v668_v37, %v666_v36  ;;  %v516_v49 = vld [vmem:[#allocation2 + $0x508] sm:$0xff]  ;;  %v672_v52 = vld [vmem:[#allocation2 + $0x718] sm:$0xff] }
  0x6b   : > { %1839 = vmatpush1.bf16.msra.mxu0 %v1838_v10  ;;  %v660_v10 = vld [vmem:[#allocation2 + $0x6b8] sm:$0xff]  ;;  %v667_v48 = vld [vmem:[#allocation2 + $0x6f0] sm:$0xff]  ;;  %v2403_v54 = vpack.i.bf16 %v2624_v46, %v2614_v3  ;;  %v515_v57 = vld [vmem:[#allocation2 + $0x500] sm:$0xff] }
  0x6c   : > { %1903 = vmatpush1.bf16.msra.mxu1 %v1902_v11  ;;  %1905 = vmatprep.subr.bf16.mxu0 %v1904_v12  ;;  %v1922_v11 = vpack.c.bf16 %v501_v1, %v499_v62  ;;  %v1986_v12 = vpack.c.bf16 %v655_v5, %v653_v2  ;;  %v1988_v17 = vpack.c.bf16 %v660_v10, %v658_v9  ;;  %v517_v58 = vld [vmem:[#allocation2 + $0x510] sm:$0xff]  ;;  %v669_v59 = vld [vmem:[#allocation2 + $0x700] sm:$0xff]  ;;  %v520_v62 = vld [vmem:[#allocation2 + $0x528] sm:$0xff] }
  0x6d   : > { %1969 = vmatprep.subr.bf16.mxu1 %v1968_v16  ;;  %v657_v16 = vld [vmem:[#allocation2 + $0x6a0] sm:$0xff]  ;;  %v676_v1 = vld [vmem:[#allocation2 + $0x738] sm:$0xff]  ;;  %v1938_v2 = vpack.c.bf16 %v517_v58, %v515_v57  ;;  %v521_v7 = vld [vmem:[#allocation2 + $0x530] sm:$0xff] }
  0x6e   : > { %304 = vmatmul.mubr.f32.vlgmr.msra.gmra.mrb[0].mxu0 %v2600_v21  ;;  %v519_v6 = vld [vmem:[#allocation2 + $0x520] sm:$0xff]  ;;  %v675_v10 = vld [vmem:[#allocation2 + $0x730] sm:$0xff] }
  0x6f   : > { %458 = vmatmul.mubr.f32.vlgmr.msra.gmra.mrb[0].mxu1 %v2603_v22  ;;  %1907 = vmatpush1.bf16.msra.mxu0 %v1906_v25  ;;  %v1978_v22 = vpack.c.bf16 %v647_v45, %v645_v43  ;;  %v1926_v25 = vpack.c.bf16 %v505_v15, %v503_v14  ;;  %v1932_v43 = vpack.c.bf16 %v514_v35, %v512_v34  ;;  %v665_v45 = vld [vmem:[#allocation2 + $0x6e0] sm:$0xff]  ;;  %v680_v14 = vld [vmem:[#allocation2 + $0x758] sm:$0xff]  ;;  %v525_v19 = vld [vmem:[#allocation2 + $0x550] sm:$0xff] }
  0x70   : > { %1971 = vmatpush1.bf16.msra.mxu1 %v1970_v26  ;;  %1909 = vmatprep.subr.bf16.mxu0 %v1908_v27  ;;  %v507_v26 = vld [vmem:[#allocation2 + $0x4c0] sm:$0xff]  ;;  %v1990_v27 = vpack.c.bf16 %v659_v18, %v657_v16  ;;  %v1942_v15 = vpack.c.bf16 %v521_v7, %v519_v6  ;;  %v679_v20 = vld [vmem:[#allocation2 + $0x750] sm:$0xff] }
  0x71   : > { %1973 = vmatprep.subr.bf16.mxu1 %v1972_v31  ;;  %v663_v31 = vld [vmem:[#allocation2 + $0x6d0] sm:$0xff]  ;;  %v673_v8 = vld [vmem:[#allocation2 + $0x720] sm:$0xff] }
  0x72   : > { %v1994_v42 = vpack.c.bf16 %v663_v31, %v661_v30  ;;  %v2006_v16 = vpack.c.bf16 %v675_v10, %v673_v8  ;;  %v523_v18 = vld [vmem:[#allocation2 + $0x540] sm:$0xff]  ;;  %v529_v34 = vld [vmem:[#allocation2 + $0x570] sm:$0xff] }
  0x73   : > { %1911 = vmatpush1.bf16.msra.mxu0 %v1910_v38  ;;  %v481_v38 = vld [vmem:[%s2593_s6 + $0x28] sm:$0xff]  ;;  %v677_v23 = vld [vmem:[#allocation2 + $0x740] sm:$0xff]  ;;  %v683_v37 = vld [vmem:[#allocation2 + $0x770] sm:$0xff] }
  0x74   : > { %1975 = vmatpush1.bf16.msra.mxu1 %v1974_v39  ;;  %1913 = vmatprep.subr.bf16.mxu0 %v1912_v40  ;;  %v2621_v39 = vld [vmem:[%s2593_s6 + $0x38] sm:$0xff]  ;;  %v1930_v40 = vpack.c.bf16 %v509_v29, %v507_v26  ;;  %v1946_v29 = vpack.c.bf16 %v525_v19, %v523_v18  ;;  %v2010_v30 = vpack.c.bf16 %v679_v20, %v677_v23  ;;  %v681_v35 = vld [vmem:[#allocation2 + $0x760] sm:$0xff]  ;;  %v541_v10 = vld [vmem:[#allocation2 + $0x5d0] sm:$0xff] }
  0x75   : > { %1977 = vmatprep.subr.bf16.mxu1 %v1976_v44  ;;  %611 = vmatprep.mubr.f32.mxu0 %v481_v38  ;;  %v513_v44 = vld [vmem:[#allocation2 + $0x4f0] sm:$0xff]  ;;  %v530_v26 = vld [vmem:[#allocation2 + $0x578] sm:$0xff]  ;;  %v535_v58 = vld [vmem:[#allocation2 + $0x5a0] sm:$0xff] }
  0x76   : > { %765 = vmatprep.mubr.f32.mxu1 %v2621_v39  ;;  %v1934_v53 = vpack.c.bf16 %v513_v44, %v511_v41  ;;  %v686_v41 = vld [vmem:[#allocation2 + $0x788] sm:$0xff]  ;;  %v2014_v44 = vpack.c.bf16 %v683_v37, %v681_v35  ;;  %v543_v23 = vld [vmem:[#allocation2 + $0x5e0] sm:$0xff]  ;;  %v793_v37 = vld [vmem:[#allocation2 + $0x810] sm:$0xff] }
  0x77   : > { %1915 = vmatpush1.bf16.msra.mxu0 %v1914_v50  ;;  %v518_v50 = vld [vmem:[#allocation2 + $0x518] sm:$0xff]  ;;  %v697_v20 = vld [vmem:[#allocation2 + $0x7e0] sm:$0xff] }
  0x78   : > { %1979 = vmatpush1.bf16.msra.mxu1 %v1978_v22  ;;  %1917 = vmatprep.subr.bf16.mxu0 %v1916_v51  ;;  %v2393_v22 = vpack.i.bf16 %v2624_v46, %v481_v38  ;;  %v670_v51 = vld [vmem:[#allocation2 + $0x708] sm:$0xff]  ;;  %v1936_v56 = vpack.c.bf16 %v518_v50, %v516_v49  ;;  %v685_v49 = vld [vmem:[#allocation2 + $0x780] sm:$0xff] }
  0x79   : > { %1981 = vmatprep.subr.bf16.mxu1 %v1980_v55  ;;  %v1998_v55 = vpack.c.bf16 %v667_v48, %v665_v45  ;;  %v2000_v60 = vpack.c.bf16 %v672_v52, %v670_v51  ;;  %v532_v38 = vld [vmem:[#allocation2 + $0x588] sm:$0xff]  ;;  %v533_v48 = vld [vmem:[#allocation2 + $0x590] sm:$0xff]  ;;  %v538_v52 = vld [vmem:[#allocation2 + $0x5b8] sm:$0xff] }
  0x7a   : > { %2394 = vrot.lane.b32.xlu1 %v2393_v22, %s2488_s7  ;;  %v687_v22 = vld [vmem:[#allocation2 + $0x790] sm:$0xff]  ;;  %v536_v51 = vld [vmem:[#allocation2 + $0x5a8] sm:$0xff]  ;;  %v832_v35 = vld [vmem:[#allocation2 + $0x940] sm:$0xff] }
  0x7b   : > { %1919 = vmatpush1.bf16.msra.mxu0 %v1918_v61  ;;  %v671_v61 = vld [vmem:[#allocation2 + $0x710] sm:$0xff]  ;;  %v1956_v57 = vpack.c.bf16 %v538_v52, %v536_v51 }
  0x7c   : > { %1983 = vmatpush1.bf16.msra.mxu1 %v1982_v63  ;;  %1921 = vmatprep.subr.bf16.mxu0 %v1920_v0  ;;  %v522_v63 = vld [vmem:[#allocation2 + $0x538] sm:$0xff]  ;;  %v674_v0 = vld [vmem:[#allocation2 + $0x728] sm:$0xff]  ;;  %v838_v52 = vld [vmem:[#allocation2 + $0x970] sm:$0xff] }
  0x7d   : > { %1985 = vmatprep.subr.bf16.mxu1 %v1984_v4  ;;  %v2002_v4 = vpack.c.bf16 %v671_v61, %v669_v59  ;;  %v1940_v5 = vpack.c.bf16 %v522_v63, %v520_v62  ;;  %v2004_v9 = vpack.c.bf16 %v676_v1, %v674_v0  ;;  %v537_v59 = vld [vmem:[#allocation2 + $0x5b0] sm:$0xff]  ;;  %v540_v63 = vld [vmem:[#allocation2 + $0x5c8] sm:$0xff]  ;;  %v542_v0 = vld [vmem:[#allocation2 + $0x5d8] sm:$0xff] }
  0x7e   : > { %2404 = vrot.lane.b32.xlu1 %v2403_v54, %s2488_s7  ;;  %v692_v54 = vld [vmem:[#allocation2 + $0x7b8] sm:$0xff]  ;;  %v691_v62 = vld [vmem:[#allocation2 + $0x7b0] sm:$0xff]  ;;  %v694_v1 = vld [vmem:[#allocation2 + $0x7c8] sm:$0xff]  ;;  %v1960_v8 = vpack.c.bf16 %v542_v0, %v540_v63 }
  0x7f   : > { %1923 = vmatpush1.bf16.msra.mxu0 %v1922_v11  ;;  %v524_v11 = vld [vmem:[#allocation2 + $0x548] sm:$0xff]  ;;  %v801_v63 = vld [vmem:[#allocation2 + $0x850] sm:$0xff] }
  0x80   : > { %1987 = vmatpush1.bf16.msra.mxu1 %v1986_v12  ;;  %1925 = vmatprep.subr.bf16.mxu0 %v1924_v13  ;;  %v526_v12 = vld [vmem:[#allocation2 + $0x558] sm:$0xff]  ;;  %v678_v13 = vld [vmem:[#allocation2 + $0x748] sm:$0xff] }
  0x81   : > { %1989 = vmatprep.subr.bf16.mxu1 %v1988_v17  ;;  %v1944_v17 = vpack.c.bf16 %v526_v12, %v524_v11  ;;  %v2008_v24 = vpack.c.bf16 %v680_v14, %v678_v13  ;;  %v693_v11 = vld [vmem:[#allocation2 + $0x7c0] sm:$0xff]  ;;  %v695_v13 = vld [vmem:[#allocation2 + $0x7d0] sm:$0xff]  ;;  %v544_v14 = vld [vmem:[#allocation2 + $0x5e8] sm:$0xff] }
  0x83   : > { %1927 = vmatpush1.bf16.msra.mxu0 %v1926_v25  ;;  %v528_v25 = vld [vmem:[#allocation2 + $0x568] sm:$0xff] }
  0x84   : > { %1991 = vmatpush1.bf16.msra.mxu1 %v1990_v27  ;;  %1929 = vmatprep.subr.bf16.mxu0 %v1928_v28  ;;  %v682_v27 = vld [vmem:[#allocation2 + $0x768] sm:$0xff]  ;;  %v684_v28 = vld [vmem:[#allocation2 + $0x778] sm:$0xff]  ;;  %v1948_v31 = vpack.c.bf16 %v530_v26, %v528_v25  ;;  %v699_v26 = vld [vmem:[#allocation2 + $0x7f0] sm:$0xff] }
  0x85   : > { %1993 = vmatprep.subr.bf16.mxu1 %v1992_v33  ;;  %v527_v33 = vld [vmem:[#allocation2 + $0x560] sm:$0xff]  ;;  %v2012_v36 = vpack.c.bf16 %v684_v28, %v682_v27  ;;  %v792_v27 = vld [vmem:[#allocation2 + $0x808] sm:$0xff]  ;;  %v794_v28 = vld [vmem:[#allocation2 + $0x818] sm:$0xff] }
  0x87   : > { %1931 = vmatpush1.bf16.msra.mxu0 %v1930_v40  ;;  %v534_v40 = vld [vmem:[#allocation2 + $0x598] sm:$0xff] }
  0x88   : > { %1995 = vmatpush1.bf16.msra.mxu1 %v1994_v42  ;;  %1933 = vmatprep.subr.bf16.mxu0 %v1932_v43  ;;  %v688_v42 = vld [vmem:[#allocation2 + $0x798] sm:$0xff]  ;;  %v1950_v43 = vpack.c.bf16 %v529_v34, %v527_v33  ;;  %v1952_v45 = vpack.c.bf16 %v534_v40, %v532_v38  ;;  %v2030_v33 = vpack.c.bf16 %v699_v26, %v697_v20  ;;  %v834_v40 = vld [vmem:[#allocation2 + $0x950] sm:$0xff]  ;;  %v812_v26 = vld [vmem:[#allocation2 + $0x8a8] sm:$0xff] }
  0x89   : > { %1997 = vmatprep.subr.bf16.mxu1 %v1996_v47  ;;  %v531_v47 = vld [vmem:[#allocation2 + $0x580] sm:$0xff]  ;;  %v2016_v50 = vpack.c.bf16 %v688_v42, %v686_v41  ;;  %v2056_v34 = vpack.c.bf16 %v794_v28, %v792_v27  ;;  %v796_v41 = vld [vmem:[#allocation2 + $0x828] sm:$0xff]  ;;  %v798_v42 = vld [vmem:[#allocation2 + $0x838] sm:$0xff] }
  0x8a   : > { %v814_v27 = vld [vmem:[#allocation2 + $0x8b8] sm:$0xff]  ;;  %v853_v28 = vld [vmem:[#allocation2 + $0x9e8] sm:$0xff] }
  0x8b   : > { %1935 = vmatpush1.bf16.msra.mxu0 %v1934_v53  ;;  %v690_v53 = vld [vmem:[#allocation2 + $0x7a8] sm:$0xff] }
  0x8c   : > { %1999 = vmatpush1.bf16.msra.mxu1 %v1998_v55  ;;  %1937 = vmatprep.subr.bf16.mxu0 %v1936_v56  ;;  %v1954_v55 = vpack.c.bf16 %v533_v48, %v531_v47  ;;  %v2018_v56 = vpack.c.bf16 %v687_v22, %v685_v49  ;;  %v2020_v61 = vpack.c.bf16 %v692_v54, %v690_v53  ;;  %v836_v49 = vld [vmem:[#allocation2 + $0x960] sm:$0xff]  ;;  %v797_v22 = vld [vmem:[#allocation2 + $0x830] sm:$0xff]  ;;  %v800_v53 = vld [vmem:[#allocation2 + $0x848] sm:$0xff] }
  0x8d   : > { %2001 = vmatprep.subr.bf16.mxu1 %v2000_v60  ;;  %v689_v60 = vld [vmem:[#allocation2 + $0x7a0] sm:$0xff]  ;;  %v2034_v47 = vpack.c.bf16 %v834_v40, %v832_v35  ;;  %v2060_v48 = vpack.c.bf16 %v798_v42, %v796_v41  ;;  %v802_v54 = vld [vmem:[#allocation2 + $0x858] sm:$0xff]  ;;  %v816_v40 = vld [vmem:[#allocation2 + $0x8c8] sm:$0xff] }
  0x8e   : > { %v2022_v7 = vpack.c.bf16 %v691_v62, %v689_v60  ;;  %v2064_v60 = vpack.c.bf16 %v802_v54, %v800_v53  ;;  %v799_v62 = vld [vmem:[#allocation2 + $0x840] sm:$0xff]  ;;  %v818_v41 = vld [vmem:[#allocation2 + $0x8d8] sm:$0xff]  ;;  %v1027_v42 = vld [vmem:[#allocation2 + $0xa08] sm:$0xff] }
  0x8f   : > { %1939 = vmatpush1.bf16.msra.mxu0 %v1938_v2  ;;  %v696_v2 = vld [vmem:[#allocation2 + $0x7d8] sm:$0xff]  ;;  %v811_v35 = vld [vmem:[#allocation2 + $0x8a0] sm:$0xff]  ;;  %v1031_v54 = vld [vmem:[#allocation2 + $0xa28] sm:$0xff] }
  0x90   : > { %2003 = vmatpush1.bf16.msra.mxu1 %v2002_v4  ;;  %1941 = vmatprep.subr.bf16.mxu0 %v1940_v5  ;;  %v2633_v4 = vld [vmem:[%s2593_s6 + $0x40] sm:$0xff]  ;;  %v1958_v5 = vpack.c.bf16 %v537_v59, %v535_v58  ;;  %v2024_v12 = vpack.c.bf16 %v696_v2, %v694_v1  ;;  %v789_v58 = vld [vmem:[%s2593_s6 + $0x48] sm:$0xff]  ;;  %v2038_v59 = vpack.c.bf16 %v838_v52, %v836_v49  ;;  %v842_v1 = vld [vmem:[#allocation2 + $0x990] sm:$0xff] }
  0x91   : > { %2005 = vmatprep.subr.bf16.mxu1 %v2004_v9  ;;  %v2398_v6 = vpack.i.bf16 %v2633_v4, %v2621_v39  ;;  %v539_v9 = vld [vmem:[#allocation2 + $0x5c0] sm:$0xff]  ;;  %v2026_v39 = vpack.c.bf16 %v695_v13, %v693_v11  ;;  %v804_v2 = vld [vmem:[#allocation2 + $0x868] sm:$0xff]  ;;  %v805_v11 = vld [vmem:[#allocation2 + $0x870] sm:$0xff] }
  0x92   : > { %v1962_v18 = vpack.c.bf16 %v541_v10, %v539_v9  ;;  %v844_v9 = vld [vmem:[#allocation2 + $0x9a0] sm:$0xff]  ;;  %v846_v13 = vld [vmem:[#allocation2 + $0x9b0] sm:$0xff]  ;;  %v820_v52 = vld [vmem:[#allocation2 + $0x8e8] sm:$0xff] }
  0x93   : > { %1943 = vmatpush1.bf16.msra.mxu0 %v1942_v15  ;;  %v546_v15 = vld [vmem:[#allocation2 + $0x5f8] sm:$0xff]  ;;  %2399 = vrot.lane.b32.xlu0 %v2398_v6, %s2488_s7  ;;  %v2066_v6 = vpack.c.bf16 %v801_v63, %v799_v62  ;;  %v803_v10 = vld [vmem:[#allocation2 + $0x860] sm:$0xff]  ;;  %v817_v49 = vld [vmem:[#allocation2 + $0x8d0] sm:$0xff] }
  0x94   : > { %2007 = vmatpush1.bf16.msra.mxu1 %v2006_v16  ;;  %1945 = vmatprep.subr.bf16.mxu0 %v1944_v17  ;;  %v698_v16 = vld [vmem:[#allocation2 + $0x7e8] sm:$0xff]  ;;  %v700_v17 = vld [vmem:[#allocation2 + $0x7f8] sm:$0xff]  ;;  %v1964_v19 = vpack.c.bf16 %v546_v15, %v544_v14  ;;  %v1032_v63 = vld [vmem:[#allocation2 + $0xa30] sm:$0xff] }
  0x95   : > { %2009 = vmatprep.subr.bf16.mxu1 %v2008_v24  ;;  %v545_v24 = vld [vmem:[#allocation2 + $0x5f0] sm:$0xff]  ;;  %v2028_v25 = vpack.c.bf16 %v700_v17, %v698_v16  ;;  %v808_v14 = vld [vmem:[#allocation2 + $0x888] sm:$0xff]  ;;  %v810_v15 = vld [vmem:[#allocation2 + $0x898] sm:$0xff]  ;;  %v2070_v17 = vpack.c.bf16 %v805_v11, %v803_v10 }
  0x96   : > { %v849_v16 = vld [vmem:[#allocation2 + $0x9c8] sm:$0xff]  ;;  %v822_v53 = vld [vmem:[#allocation2 + $0x8f8] sm:$0xff]  ;;  %v1036_v11 = vld [vmem:[#allocation2 + $0xa50] sm:$0xff] }
  0x97   : > { %1947 = vmatpush1.bf16.msra.mxu0 %v1946_v29  ;;  %v833_v29 = vld [vmem:[#allocation2 + $0x948] sm:$0xff] }
  0x98   : > { %2011 = vmatpush1.bf16.msra.mxu1 %v2010_v30  ;;  %1949 = vmatprep.subr.bf16.mxu0 %v1948_v31  ;;  %v835_v30 = vld [vmem:[#allocation2 + $0x958] sm:$0xff]  ;;  %v1966_v31 = vpack.c.bf16 %v545_v24, %v543_v23  ;;  %v807_v23 = vld [vmem:[#allocation2 + $0x880] sm:$0xff]  ;;  %v809_v24 = vld [vmem:[#allocation2 + $0x890] sm:$0xff] }
  0x99   : > { %2013 = vmatprep.subr.bf16.mxu1 %v2012_v36  ;;  %v791_v36 = vld [vmem:[#allocation2 + $0x800] sm:$0xff]  ;;  %v2032_v38 = vpack.c.bf16 %v835_v30, %v833_v29  ;;  %v855_v29 = vld [vmem:[#allocation2 + $0x9f8] sm:$0xff]  ;;  %v2074_v30 = vpack.c.bf16 %v809_v24, %v807_v23 }
  0x9b   : > { %1951 = vmatpush1.bf16.msra.mxu0 %v1950_v43  ;;  %v837_v43 = vld [vmem:[#allocation2 + $0x968] sm:$0xff] }
  0x9c   : > { %2015 = vmatpush1.bf16.msra.mxu1 %v2014_v44  ;;  %1953 = vmatprep.subr.bf16.mxu0 %v1952_v45  ;;  %v839_v44 = vld [vmem:[#allocation2 + $0x978] sm:$0xff]  ;;  %v2058_v45 = vpack.c.bf16 %v793_v37, %v791_v36  ;;  %v813_v36 = vld [vmem:[#allocation2 + $0x8b0] sm:$0xff]  ;;  %v2052_v37 = vpack.c.bf16 %v855_v29, %v853_v28  ;;  %v1043_v28 = vld [vmem:[#allocation2 + $0xa88] sm:$0xff] }
  0x9d   : > { %2017 = vmatprep.subr.bf16.mxu1 %v2016_v50  ;;  %v795_v50 = vld [vmem:[#allocation2 + $0x820] sm:$0xff]  ;;  %v2036_v51 = vpack.c.bf16 %v839_v44, %v837_v43  ;;  %v1029_v43 = vld [vmem:[#allocation2 + $0xa18] sm:$0xff]  ;;  %v2078_v44 = vpack.c.bf16 %v813_v36, %v811_v35 }
  0x9e   : > { %v1045_v29 = vld [vmem:[#allocation2 + $0xa98] sm:$0xff]  ;;  %v1042_v35 = vld [vmem:[#allocation2 + $0xa80] sm:$0xff] }
  0x9f   : > { %1955 = vmatpush1.bf16.msra.mxu0 %v1954_v55  ;;  %v841_v55 = vld [vmem:[#allocation2 + $0x988] sm:$0xff]  ;;  %v1194_v36 = vld [vmem:[#allocation2 + $0xc00] sm:$0xff] }
  0xa0   : > { %2019 = vmatpush1.bf16.msra.mxu1 %v2018_v56  ;;  %1957 = vmatprep.subr.bf16.mxu0 %v1956_v57  ;;  %v843_v56 = vld [vmem:[#allocation2 + $0x998] sm:$0xff]  ;;  %v2062_v57 = vpack.c.bf16 %v797_v22, %v795_v50  ;;  %v1026_v50 = vld [vmem:[#allocation2 + $0xa00] sm:$0xff]  ;;  %v2096_v22 = vpack.c.bf16 %v1029_v43, %v1027_v42  ;;  %v1047_v43 = vld [vmem:[#allocation2 + $0xaa8] sm:$0xff] }
  0xa1   : > { %2021 = vmatprep.subr.bf16.mxu1 %v2020_v61  ;;  %v840_v61 = vld [vmem:[#allocation2 + $0x980] sm:$0xff]  ;;  %v2040_v0 = vpack.c.bf16 %v843_v56, %v841_v55  ;;  %v1033_v55 = vld [vmem:[#allocation2 + $0xa38] sm:$0xff] }
  0xa2   : > { %v2100_v62 = vpack.c.bf16 %v1033_v55, %v1031_v54  ;;  %v1201_v42 = vld [vmem:[#allocation2 + $0xc38] sm:$0xff]  ;;  %v1051_v55 = vld [vmem:[#allocation2 + $0xac8] sm:$0xff] }
  0xa3   : > { %1959 = vmatpush1.bf16.msra.mxu0 %v1958_v5  ;;  %v845_v5 = vld [vmem:[#allocation2 + $0x9a8] sm:$0xff]  ;;  %v1205_v54 = vld [vmem:[#allocation2 + $0xc58] sm:$0xff] }
  0xa4   : > { %2023 = vmatpush1.bf16.msra.mxu1 %v2022_v7  ;;  %1961 = vmatprep.subr.bf16.mxu0 %v1960_v8  ;;  %v2042_v7 = vpack.c.bf16 %v842_v1, %v840_v61  ;;  %v1030_v61 = vld [vmem:[#allocation2 + $0xa20] sm:$0xff]  ;;  %v826_v1 = vld [vmem:[#allocation2 + $0x918] sm:$0xff] }
  0xa5   : > { %2025 = vmatprep.subr.bf16.mxu1 %v2024_v12 }
  0xa7   : > { %1963 = vmatpush1.bf16.msra.mxu0 %v1962_v18  ;;  %v2046_v18 = vpack.c.bf16 %v846_v13, %v844_v9  ;;  %v1034_v9 = vld [vmem:[#allocation2 + $0xa40] sm:$0xff]  ;;  %v830_v13 = vld [vmem:[#allocation2 + $0x938] sm:$0xff] }
  0xa8   : > { %2027 = vmatpush1.bf16.msra.mxu1 %v2026_v39  ;;  %1965 = vmatprep.subr.bf16.mxu0 %v1964_v19  ;;  %v2072_v39 = vpack.c.bf16 %v810_v15, %v808_v14  ;;  %v848_v19 = vld [vmem:[#allocation2 + $0x9c0] sm:$0xff]  ;;  %v1039_v14 = vld [vmem:[#allocation2 + $0xa68] sm:$0xff]  ;;  %v1041_v15 = vld [vmem:[#allocation2 + $0xa78] sm:$0xff] }
  0xa9   : > { %2029 = vmatprep.subr.bf16.mxu1 %v2028_v25  ;;  %v850_v25 = vld [vmem:[#allocation2 + $0x9d0] sm:$0xff] }
  0xab   : > { %1967 = vmatpush1.bf16.msra.mxu0 %v1966_v31  ;;  %v2050_v31 = vpack.c.bf16 %v850_v25, %v848_v19  ;;  %v1038_v19 = vld [vmem:[#allocation2 + $0xa60] sm:$0xff]  ;;  %v1040_v25 = vld [vmem:[#allocation2 + $0xa70] sm:$0xff] }
  0xac   : > { %2031 = vmatpush1.bf16.msra.mxu1 %v2030_v33  ;;  %2057 = vmatprep.subr.bf16.mxu0 %v2056_v34  ;;  %v2076_v33 = vpack.c.bf16 %v814_v27, %v812_v26  ;;  %v852_v34 = vld [vmem:[#allocation2 + $0x9e0] sm:$0xff]  ;;  %v1195_v26 = vld [vmem:[#allocation2 + $0xc08] sm:$0xff]  ;;  %v1197_v27 = vld [vmem:[#allocation2 + $0xc18] sm:$0xff] }
  0xad   : > { %2033 = vmatprep.subr.bf16.mxu1 %v2032_v38  ;;  %v854_v38 = vld [vmem:[#allocation2 + $0x9f0] sm:$0xff] }
  0xae   : > { %612 = vmatmul.mubr.f32.vlgmr.msra.gmra.mrb[2].mxu0 %v2614_v3  ;;  %v806_v3 = vld [vmem:[#allocation2 + $0x878] sm:$0xff] }
  0xaf   : > { %766 = vmatmul.mubr.f32.vlgmr.msra.gmra.mrb[2].mxu1 %v2624_v46  ;;  %2059 = vmatpush1.bf16.msra.mxu0 %v2058_v45  ;;  %v847_v46 = vld [vmem:[#allocation2 + $0x9b8] sm:$0xff]  ;;  %v2068_v8 = vpack.c.bf16 %v806_v3, %v804_v2  ;;  %v2054_v45 = vpack.c.bf16 %v854_v38, %v852_v34  ;;  %v1035_v2 = vld [vmem:[#allocation2 + $0xa48] sm:$0xff]  ;;  %v2160_v34 = vpack.c.bf16 %v1197_v27, %v1195_v26 }
  0xb0   : > { %2035 = vmatpush1.bf16.msra.mxu1 %v2034_v47  ;;  %2061 = vmatprep.subr.bf16.mxu0 %v2060_v48  ;;  %v2044_v12 = vpack.c.bf16 %v847_v46, %v845_v5  ;;  %v2080_v47 = vpack.c.bf16 %v818_v41, %v816_v40  ;;  %v815_v48 = vld [vmem:[#allocation2 + $0x8c0] sm:$0xff]  ;;  %v1037_v3 = vld [vmem:[#allocation2 + $0xa58] sm:$0xff]  ;;  %v2102_v46 = vpack.c.bf16 %v1032_v63, %v1030_v61  ;;  %v1044_v40 = vld [vmem:[#allocation2 + $0xa90] sm:$0xff] }
  0xb1   : > { %2037 = vmatprep.subr.bf16.mxu1 %v2036_v51  ;;  %924 = vmatprep.mubr.f32.mxu1 %v2487_v32  ;;  %v851_v32 = vld [vmem:[#allocation2 + $0x9d8] sm:$0xff]  ;;  %v1028_v51 = vld [vmem:[#allocation2 + $0xa10] sm:$0xff]  ;;  %v2082_v56 = vpack.c.bf16 %v817_v49, %v815_v48  ;;  %v2104_v10 = vpack.c.bf16 %v1037_v3, %v1035_v2  ;;  %v2112_v38 = vpack.c.bf16 %v1045_v29, %v1043_v28  ;;  %v1199_v41 = vld [vmem:[#allocation2 + $0xc28] sm:$0xff] }
  0xb2   : > { %1772 = vmatprep.mubr.msk.f32.mxu0 %vm931_vm0, %v789_v58  ;;  %v2048_v20 = vpack.c.bf16 %v851_v32, %v849_v16  ;;  %v2084_v58 = vpack.c.bf16 %v822_v53, %v820_v52  ;;  %v2164_v48 = vpack.c.bf16 %v1201_v42, %v1199_v41  ;;  %v1046_v49 = vld [vmem:[#allocation2 + $0xaa0] sm:$0xff]  ;;  %v1048_v52 = vld [vmem:[#allocation2 + $0xab0] sm:$0xff]  ;;  %v1203_v53 = vld [vmem:[#allocation2 + $0xc48] sm:$0xff] }
  0xb3   : > { %2063 = vmatpush1.bf16.msra.mxu0 %v2062_v57  ;;  %v2098_v57 = vpack.c.bf16 %v1028_v51, %v1026_v50  ;;  %v1198_v50 = vld [vmem:[#allocation2 + $0xc20] sm:$0xff]  ;;  %v1209_v2 = vld [vmem:[#allocation2 + $0xc78] sm:$0xff]  ;;  %v1055_v3 = vld [vmem:[#allocation2 + $0xae8] sm:$0xff] }
  0xb4   : > { %2039 = vmatpush1.bf16.msra.mxu1 %v2038_v59  ;;  %2065 = vmatprep.subr.bf16.mxu0 %v2064_v60  ;;  %v819_v59 = vld [vmem:[#allocation2 + $0x8e0] sm:$0xff]  ;;  %v821_v60 = vld [vmem:[#allocation2 + $0x8f0] sm:$0xff]  ;;  %v1217_v26 = vld [vmem:[#allocation2 + $0xcb8] sm:$0xff] }
  0xb5   : > { %2041 = vmatprep.subr.bf16.mxu1 %v2040_v0  ;;  %v824_v0 = vld [vmem:[#allocation2 + $0x908] sm:$0xff]  ;;  %v2086_v5 = vpack.c.bf16 %v821_v60, %v819_v59  ;;  %v2168_v59 = vpack.c.bf16 %v1205_v54, %v1203_v53  ;;  %v1050_v60 = vld [vmem:[#allocation2 + $0xac0] sm:$0xff]  ;;  %v1065_v28 = vld [vmem:[#allocation2 + $0xb38] sm:$0xff] }
  0xb6   : > { %v1202_v61 = vld [vmem:[#allocation2 + $0xc40] sm:$0xff]  ;;  %v1063_v27 = vld [vmem:[#allocation2 + $0xb28] sm:$0xff]  ;;  %v1069_v42 = vld [vmem:[#allocation2 + $0xb58] sm:$0xff] }
  0xb7   : > { %2067 = vmatpush1.bf16.msra.mxu0 %v2066_v6  ;;  %v2088_v6 = vpack.c.bf16 %v826_v1, %v824_v0  ;;  %v1052_v0 = vld [vmem:[#allocation2 + $0xad0] sm:$0xff]  ;;  %v1207_v1 = vld [vmem:[#allocation2 + $0xc68] sm:$0xff]  ;;  %v1073_v54 = vld [vmem:[#allocation2 + $0xb78] sm:$0xff] }
  0xb8   : > { %2043 = vmatpush1.bf16.msra.mxu1 %v2042_v7  ;;  %2069 = vmatprep.subr.bf16.mxu0 %v2068_v8  ;;  %v823_v7 = vld [vmem:[#allocation2 + $0x900] sm:$0xff]  ;;  %v825_v8 = vld [vmem:[#allocation2 + $0x910] sm:$0xff]  ;;  %v1067_v41 = vld [vmem:[#allocation2 + $0xb48] sm:$0xff] }
  0xb9   : > { %2045 = vmatprep.subr.bf16.mxu1 %v2044_v12  ;;  %v828_v12 = vld [vmem:[#allocation2 + $0x928] sm:$0xff]  ;;  %v2090_v16 = vpack.c.bf16 %v825_v8, %v823_v7  ;;  %v1054_v7 = vld [vmem:[#allocation2 + $0xae0] sm:$0xff] }
  0xba   : > { %v1206_v8 = vld [vmem:[#allocation2 + $0xc60] sm:$0xff]  ;;  %v1071_v53 = vld [vmem:[#allocation2 + $0xb68] sm:$0xff] }
  0xbb   : > { %2071 = vmatpush1.bf16.msra.mxu0 %v2070_v17  ;;  %v2092_v17 = vpack.c.bf16 %v830_v13, %v828_v12  ;;  %v1211_v12 = vld [vmem:[#allocation2 + $0xc88] sm:$0xff]  ;;  %v1213_v13 = vld [vmem:[#allocation2 + $0xc98] sm:$0xff] }
  0xbc   : > { %2047 = vmatpush1.bf16.msra.mxu1 %v2046_v18  ;;  %2073 = vmatprep.subr.bf16.mxu0 %v2072_v39  ;;  %v827_v18 = vld [vmem:[#allocation2 + $0x920] sm:$0xff]  ;;  %v829_v39 = vld [vmem:[#allocation2 + $0x930] sm:$0xff] }
  0xbd   : > { %2049 = vmatprep.subr.bf16.mxu1 %v2048_v20  ;;  %v2108_v20 = vpack.c.bf16 %v1041_v15, %v1039_v14  ;;  %v1059_v14 = vld [vmem:[#allocation2 + $0xb08] sm:$0xff]  ;;  %v1061_v15 = vld [vmem:[#allocation2 + $0xb18] sm:$0xff] }
  0xbf   : > { %2075 = vmatpush1.bf16.msra.mxu0 %v2074_v30 }
  0xc0   : > { %2051 = vmatpush1.bf16.msra.mxu1 %v2050_v31  ;;  %2077 = vmatprep.subr.bf16.mxu0 %v2076_v33  ;;  %v2094_v31 = vpack.c.bf16 %v829_v39, %v827_v18  ;;  %v2110_v33 = vpack.c.bf16 %v1040_v25, %v1038_v19  ;;  %v1058_v18 = vld [vmem:[#allocation2 + $0xb00] sm:$0xff]  ;;  %v1212_v19 = vld [vmem:[#allocation2 + $0xc90] sm:$0xff]  ;;  %v1215_v25 = vld [vmem:[#allocation2 + $0xca8] sm:$0xff] }
  0xc1   : > { %2053 = vmatprep.subr.bf16.mxu1 %v2052_v37  ;;  %v2644_v32 = vpop.permute.xlu0 %2379  ;;  %v1196_v37 = vld [vmem:[#allocation2 + $0xc10] sm:$0xff]  ;;  %v1210_v39 = vld [vmem:[#allocation2 + $0xc80] sm:$0xff] }
  0xc2   : > { %v2382_v23 = vunpack.i.h.bf16 %v2644_v32  ;;  %v2381_v24 = vunpack.i.l.bf16 %v2644_v32  ;;  %v2178_v29 = vpack.c.bf16 %v1212_v19, %v1210_v39  ;;  %v1078_v19 = vld [vmem:[#allocation2 + $0xba0] sm:$0xff] }
  0xc3   : > { %2079 = vmatpush1.bf16.msra.mxu0 %v2078_v44  ;;  %v1049_v44 = vld [vmem:[#allocation2 + $0xab8] sm:$0xff] }
  0xc4   : > { %2055 = vmatpush1.bf16.msra.mxu1 %v2054_v45  ;;  %2081 = vmatprep.subr.bf16.mxu0 %v2080_v47  ;;  %v1100_v30 = vsel %vm931_vm0, %v2381_v24, %v2382_v23  ;;  %v2162_v45 = vpack.c.bf16 %v1196_v37, %v1194_v36  ;;  %v2114_v47 = vpack.c.bf16 %v1044_v40, %v1042_v35  ;;  %v1216_v35 = vld [vmem:[#allocation2 + $0xcb0] sm:$0xff]  ;;  %v1221_v40 = vld [vmem:[#allocation2 + $0xcd8] sm:$0xff] }
  0xc5   : > { %2097 = vmatprep.subr.bf16.mxu1 %v2096_v22  ;;  %v1200_v22 = vld [vmem:[#allocation2 + $0xc30] sm:$0xff]  ;;  %v2116_v51 = vpack.c.bf16 %v1049_v44, %v1047_v43  ;;  %v2128_v23 = vpack.c.bf16 %v1061_v15, %v1059_v14  ;;  %v2132_v36 = vpack.c.bf16 %v1065_v28, %v1063_v27  ;;  %v1231_v14 = vld [vmem:[#allocation2 + $0xd28] sm:$0xff]  ;;  %v1233_v15 = vld [vmem:[#allocation2 + $0xd38] sm:$0xff] }
  0xc6   : > { %v1064_v37 = vld [vmem:[#allocation2 + $0xb30] sm:$0xff]  ;;  %v2196_v39 = vpack.c.bf16 %v1233_v15, %v1231_v14  ;;  %v1235_v27 = vld [vmem:[#allocation2 + $0xd48] sm:$0xff]  ;;  %v1237_v28 = vld [vmem:[#allocation2 + $0xd58] sm:$0xff] }
  0xc7   : > { %1771 = vmatmul.mubr.msk.f32.vlgmr.msra.gmra.mrb[4].mxu1 %vm856_vm1, %v2600_v21  ;;  %2083 = vmatpush1.bf16.msra.mxu0 %v2082_v56  ;;  %v2106_v21 = vpack.c.bf16 %v1036_v11, %v1034_v9  ;;  %v1053_v56 = vld [vmem:[#allocation2 + $0xad8] sm:$0xff]  ;;  %v1208_v9 = vld [vmem:[#allocation2 + $0xc70] sm:$0xff]  ;;  %v1246_v15 = vld [vmem:[#allocation2 + $0xda0] sm:$0xff] }
  0xc8   : > { %2099 = vmatpush1.bf16.msra.mxu1 %v2098_v57  ;;  %2085 = vmatprep.subr.bf16.mxu0 %v2084_v58  ;;  %v2166_v57 = vpack.c.bf16 %v1200_v22, %v1198_v50  ;;  %v2118_v58 = vpack.c.bf16 %v1048_v52, %v1046_v49  ;;  %v2120_v63 = vpack.c.bf16 %v1053_v56, %v1051_v55  ;;  %v1056_v11 = vld [vmem:[#allocation2 + $0xaf0] sm:$0xff]  ;;  %v1225_v52 = vld [vmem:[#allocation2 + $0xcf8] sm:$0xff] }
  0xc9   : > { %2101 = vmatprep.subr.bf16.mxu1 %v2100_v62  ;;  %1167 = vmatprep.mubr.f32.mxu1 %v1100_v30  ;;  %v1204_v62 = vld [vmem:[#allocation2 + $0xc50] sm:$0xff]  ;;  %v2136_v50 = vpack.c.bf16 %v1069_v42, %v1067_v41  ;;  %v1239_v41 = vld [vmem:[#allocation2 + $0xd68] sm:$0xff]  ;;  %v1241_v42 = vld [vmem:[#allocation2 + $0xd78] sm:$0xff] }
  0xca   : > { %v1220_v49 = vld [vmem:[#allocation2 + $0xcd0] sm:$0xff] }
  0xcb   : > { %2087 = vmatpush1.bf16.msra.mxu0 %v2086_v5  ;;  %v1057_v5 = vld [vmem:[#allocation2 + $0xaf8] sm:$0xff]  ;;  %v1068_v22 = vld [vmem:[#allocation2 + $0xb50] sm:$0xff] }
  0xcc   : > { %2103 = vmatpush1.bf16.msra.mxu1 %v2102_v46  ;;  %2089 = vmatprep.subr.bf16.mxu0 %v2088_v6  ;;  %v2122_v46 = vpack.c.bf16 %v1052_v0, %v1050_v60  ;;  %v2172_v6 = vpack.c.bf16 %v1209_v2, %v1207_v1  ;;  %v1224_v60 = vld [vmem:[#allocation2 + $0xcf0] sm:$0xff]  ;;  %v1229_v0 = vld [vmem:[#allocation2 + $0xd18] sm:$0xff]  ;;  %v1075_v2 = vld [vmem:[#allocation2 + $0xb88] sm:$0xff] }
  0xcd   : > { %2105 = vmatprep.subr.bf16.mxu1 %v2104_v10  ;;  %v2124_v10 = vpack.c.bf16 %v1057_v5, %v1055_v3  ;;  %v1077_v3 = vld [vmem:[#allocation2 + $0xb98] sm:$0xff] }
  0xcf   : > { %2091 = vmatpush1.bf16.msra.mxu0 %v2090_v16  ;;  %v2174_v16 = vpack.c.bf16 %v1208_v9, %v1206_v8  ;;  %v1074_v8 = vld [vmem:[#allocation2 + $0xb80] sm:$0xff] }
  0xd0   : > { %2107 = vmatpush1.bf16.msra.mxu1 %v2106_v21  ;;  %2093 = vmatprep.subr.bf16.mxu0 %v2092_v17  ;;  %v2126_v21 = vpack.c.bf16 %v1056_v11, %v1054_v7  ;;  %v2176_v17 = vpack.c.bf16 %v1213_v13, %v1211_v12  ;;  %v1226_v9 = vld [vmem:[#allocation2 + $0xd00] sm:$0xff]  ;;  %v2144_v12 = vpack.c.bf16 %v1077_v3, %v1075_v2  ;;  %v1076_v13 = vld [vmem:[#allocation2 + $0xb90] sm:$0xff] }
  0xd1   : > { %2109 = vmatprep.subr.bf16.mxu1 %v2108_v20  ;;  %v1060_v20 = vld [vmem:[#allocation2 + $0xb10] sm:$0xff] }
  0xd2   : > { %v2130_v30 = vpack.c.bf16 %v1060_v20, %v1058_v18  ;;  %v2146_v18 = vpack.c.bf16 %v1076_v13, %v1074_v8  ;;  %v1232_v20 = vld [vmem:[#allocation2 + $0xd30] sm:$0xff]  ;;  %v1369_v8 = vld [vmem:[#allocation2 + $0xe38] sm:$0xff] }
  0xd3   : > { %2095 = vmatpush1.bf16.msra.mxu0 %v2094_v31  ;;  %v2180_v31 = vpack.c.bf16 %v1217_v26, %v1215_v25  ;;  %v1080_v26 = vld [vmem:[#allocation2 + $0xbb0] sm:$0xff] }
  0xd4   : > { %2111 = vmatpush1.bf16.msra.mxu1 %v2110_v33  ;;  %2161 = vmatprep.subr.bf16.mxu0 %v2160_v34  ;;  %v1062_v33 = vld [vmem:[#allocation2 + $0xb20] sm:$0xff]  ;;  %v1364_v3 = vld [vmem:[#allocation2 + $0xe10] sm:$0xff] }
  0xd5   : > { %2113 = vmatprep.subr.bf16.mxu1 %v2112_v38  ;;  %v1214_v34 = vld [vmem:[#allocation2 + $0xca0] sm:$0xff]  ;;  %v1219_v38 = vld [vmem:[#allocation2 + $0xcc8] sm:$0xff]  ;;  %v2134_v44 = vpack.c.bf16 %v1064_v37, %v1062_v33  ;;  %v2150_v33 = vpack.c.bf16 %v1080_v26, %v1078_v19  ;;  %v1236_v37 = vld [vmem:[#allocation2 + $0xd50] sm:$0xff] }
  0xd6   : > { %1000 = vmatmul.mubr.f32.vlgmr.msra.gmra.mrb[4].mxu0 %v2633_v4  ;;  %v2170_v4 = vpack.c.bf16 %v1204_v62, %v1202_v61  ;;  %v2182_v43 = vpack.c.bf16 %v1216_v35, %v1214_v34  ;;  %v2140_v61 = vpack.c.bf16 %v1073_v54, %v1071_v53  ;;  %v1072_v62 = vld [vmem:[#allocation2 + $0xb70] sm:$0xff]  ;;  %v2200_v34 = vpack.c.bf16 %v1237_v28, %v1235_v27  ;;  %v1082_v35 = vld [vmem:[#allocation2 + $0xbc0] sm:$0xff]  ;;  %v1243_v54 = vld [vmem:[#allocation2 + $0xd88] sm:$0xff] }
  0xd7   : > { %2163 = vmatpush1.bf16.msra.mxu0 %v2162_v45  ;;  %v2184_v45 = vpack.c.bf16 %v1221_v40, %v1219_v38  ;;  %v1084_v40 = vld [vmem:[#allocation2 + $0xbd0] sm:$0xff]  ;;  %v1253_v19 = vld [vmem:[#allocation2 + $0xdd8] sm:$0xff]  ;;  %v1250_v27 = vld [vmem:[#allocation2 + $0xdc0] sm:$0xff] }
  0xd8   : > { %2115 = vmatpush1.bf16.msra.mxu1 %v2114_v47  ;;  %2165 = vmatprep.subr.bf16.mxu0 %v2164_v48  ;;  %v1066_v47 = vld [vmem:[#allocation2 + $0xb40] sm:$0xff]  ;;  %v2652_v1 = vpop.permute.xlu0 %2384  ;;  %v1088_v53 = vld [vmem:[#allocation2 + $0xbf0] sm:$0xff] }
  0xd9   : > { %2117 = vmatprep.subr.bf16.mxu1 %v2116_v51  ;;  %v1218_v48 = vld [vmem:[#allocation2 + $0xcc0] sm:$0xff]  ;;  %v1223_v51 = vld [vmem:[#allocation2 + $0xce8] sm:$0xff]  ;;  %v2138_v56 = vpack.c.bf16 %v1068_v22, %v1066_v47  ;;  %v2387_v5 = vunpack.i.h.bf16 %v2652_v1  ;;  %v2154_v47 = vpack.c.bf16 %v1084_v40, %v1082_v35  ;;  %v1240_v22 = vld [vmem:[#allocation2 + $0xd70] sm:$0xff] }
  0xda   : > { %v2186_v55 = vpack.c.bf16 %v1220_v49, %v1218_v48  ;;  %v2204_v48 = vpack.c.bf16 %v1241_v42, %v1239_v41  ;;  %v1086_v49 = vld [vmem:[#allocation2 + $0xbe0] sm:$0xff]  ;;  %v1252_v28 = vld [vmem:[#allocation2 + $0xdd0] sm:$0xff]  ;;  %v1375_v35 = vld [vmem:[#allocation2 + $0xe68] sm:$0xff] }
  0xdb   : > { %2167 = vmatpush1.bf16.msra.mxu0 %v2166_v57  ;;  %v2188_v57 = vpack.c.bf16 %v1225_v52, %v1223_v51  ;;  %v2659_v51 = vpop.permute.xlu1 %2389  ;;  %v1254_v41 = vld [vmem:[#allocation2 + $0xde0] sm:$0xff]  ;;  %v1256_v42 = vld [vmem:[#allocation2 + $0xdf0] sm:$0xff] }
  0xdc   : > { %2119 = vmatpush1.bf16.msra.mxu1 %v2118_v58  ;;  %2169 = vmatprep.subr.bf16.mxu0 %v2168_v59  ;;  %v1070_v58 = vld [vmem:[#allocation2 + $0xb60] sm:$0xff] }
  0xdd   : > { %2121 = vmatprep.subr.bf16.mxu1 %v2120_v63  ;;  %v1222_v59 = vld [vmem:[#allocation2 + $0xce0] sm:$0xff]  ;;  %v1227_v63 = vld [vmem:[#allocation2 + $0xd08] sm:$0xff] }
  0xde   : > { %v2192_v7 = vpack.c.bf16 %v1229_v0, %v1227_v63  ;;  %v1244_v63 = vld [vmem:[#allocation2 + $0xd90] sm:$0xff]  ;;  %v1362_v0 = vld [vmem:[#allocation2 + $0xe00] sm:$0xff] }
  0xdf   : > { %2171 = vmatpush1.bf16.msra.mxu0 %v2170_v4  ;;  %v2386_v4 = vunpack.i.l.bf16 %v2652_v1  ;;  %v2226_v13 = vpack.c.bf16 %v1364_v3, %v1362_v0  ;;  %v1539_v1 = vld [vmem:[#allocation2 + $0x1048] sm:$0xff] }
  0xe0   : > { %2123 = vmatpush1.bf16.msra.mxu1 %v2122_v46  ;;  %2173 = vmatprep.subr.bf16.mxu0 %v2172_v6  ;;  %v2190_v46 = vpack.c.bf16 %v1224_v60, %v1222_v59  ;;  %v2142_v6 = vpack.c.bf16 %v1072_v62, %v1070_v58  ;;  %v2391_v59 = vunpack.i.l.bf16 %v2659_v51  ;;  %v2158_v60 = vpack.c.bf16 %v1088_v53, %v1086_v49  ;;  %v1242_v62 = vld [vmem:[#allocation2 + $0xd80] sm:$0xff]  ;;  %v1379_v49 = vld [vmem:[#allocation2 + $0xe88] sm:$0xff] }
  0xe1   : > { %2125 = vmatprep.subr.bf16.mxu1 %v2124_v10  ;;  %v1228_v10 = vld [vmem:[#allocation2 + $0xd10] sm:$0xff]  ;;  %v1268_v11 = vsel %vm931_vm0, %v2386_v4, %v2387_v5  ;;  %v1247_v5 = vld [vmem:[#allocation2 + $0xda8] sm:$0xff] }
  0xe2   : > { %1335 = vmatprep.mubr.f32.mxu0 %v1268_v11  ;;  %v2210_v11 = vpack.c.bf16 %v1244_v63, %v1242_v62  ;;  %v1383_v62 = vld [vmem:[#allocation2 + $0xea8] sm:$0xff]  ;;  %v1385_v63 = vld [vmem:[#allocation2 + $0xeb8] sm:$0xff] }
  0xe3   : > { %2175 = vmatpush1.bf16.msra.mxu0 %v2174_v16  ;;  %v1079_v16 = vld [vmem:[#allocation2 + $0xba8] sm:$0xff] }
  0xe4   : > { %2127 = vmatpush1.bf16.msra.mxu1 %v2126_v21  ;;  %2177 = vmatprep.subr.bf16.mxu0 %v2176_v17  ;;  %v1081_v21 = vld [vmem:[#allocation2 + $0xbb8] sm:$0xff]  ;;  %v2194_v17 = vpack.c.bf16 %v1228_v10, %v1226_v9 }
  0xe5   : > { %2129 = vmatprep.subr.bf16.mxu1 %v2128_v23  ;;  %v1230_v23 = vld [vmem:[#allocation2 + $0xd20] sm:$0xff]  ;;  %v2148_v25 = vpack.c.bf16 %v1081_v21, %v1079_v16  ;;  %v1248_v16 = vld [vmem:[#allocation2 + $0xdb0] sm:$0xff] }
  0xe6   : > { %v1366_v21 = vld [vmem:[#allocation2 + $0xe20] sm:$0xff]  ;;  %v2214_v32 = vpack.c.bf16 %v1248_v16, %v1246_v15  ;;  %v1389_v15 = vld [vmem:[#allocation2 + $0xed8] sm:$0xff] }
  0xe7   : > { %2179 = vmatpush1.bf16.msra.mxu0 %v2178_v29  ;;  %v1083_v29 = vld [vmem:[#allocation2 + $0xbc8] sm:$0xff] }
  0xe8   : > { %2131 = vmatpush1.bf16.msra.mxu1 %v2130_v30  ;;  %2181 = vmatprep.subr.bf16.mxu0 %v2180_v31  ;;  %v1085_v30 = vld [vmem:[#allocation2 + $0xbd8] sm:$0xff]  ;;  %v2198_v31 = vpack.c.bf16 %v1232_v20, %v1230_v23  ;;  %v1371_v23 = vld [vmem:[#allocation2 + $0xe48] sm:$0xff] }
  0xe9   : > { %2133 = vmatprep.subr.bf16.mxu1 %v2132_v36  ;;  %v1234_v36 = vld [vmem:[#allocation2 + $0xd40] sm:$0xff]  ;;  %v2152_v38 = vpack.c.bf16 %v1085_v30, %v1083_v29  ;;  %v1373_v20 = vld [vmem:[#allocation2 + $0xe58] sm:$0xff] }
  0xea   : > { %v1370_v29 = vld [vmem:[#allocation2 + $0xe40] sm:$0xff]  ;;  %v2232_v30 = vpack.c.bf16 %v1373_v20, %v1371_v23  ;;  %v1540_v23 = vld [vmem:[#allocation2 + $0x1050] sm:$0xff] }
  0xeb   : > { %2183 = vmatpush1.bf16.msra.mxu0 %v2182_v43  ;;  %v1087_v43 = vld [vmem:[#allocation2 + $0xbe8] sm:$0xff] }
  0xec   : > { %2135 = vmatpush1.bf16.msra.mxu1 %v2134_v44  ;;  %2185 = vmatprep.subr.bf16.mxu0 %v2184_v45  ;;  %v1089_v44 = vld [vmem:[#allocation2 + $0xbf8] sm:$0xff]  ;;  %v2202_v45 = vpack.c.bf16 %v1236_v37, %v1234_v36  ;;  %v2218_v37 = vpack.c.bf16 %v1252_v28, %v1250_v27 }
  0xed   : > { %2137 = vmatprep.subr.bf16.mxu1 %v2136_v50  ;;  %v1238_v50 = vld [vmem:[#allocation2 + $0xd60] sm:$0xff]  ;;  %v2156_v52 = vpack.c.bf16 %v1089_v44, %v1087_v43  ;;  %v1377_v36 = vld [vmem:[#allocation2 + $0xe78] sm:$0xff] }
  0xee   : > { %v2206_v58 = vpack.c.bf16 %v1240_v22, %v1238_v50  ;;  %v1374_v43 = vld [vmem:[#allocation2 + $0xe60] sm:$0xff]  ;;  %v2236_v44 = vpack.c.bf16 %v1377_v36, %v1375_v35  ;;  %v1381_v50 = vld [vmem:[#allocation2 + $0xe98] sm:$0xff]  ;;  %v2392_v22 = vunpack.i.h.bf16 %v2659_v51  ;;  %v1392_v36 = vld [vmem:[#allocation2 + $0xef0] sm:$0xff] }
  0xef   : > { %2187 = vmatpush1.bf16.msra.mxu0 %v2186_v55  ;;  %v1245_v55 = vld [vmem:[#allocation2 + $0xd98] sm:$0xff] }
  0xf0   : > { %2139 = vmatpush1.bf16.msra.mxu1 %v2138_v56  ;;  %2189 = vmatprep.subr.bf16.mxu0 %v2188_v57  ;;  %v1363_v56 = vld [vmem:[#allocation2 + $0xe08] sm:$0xff]  ;;  %v1365_v57 = vld [vmem:[#allocation2 + $0xe18] sm:$0xff]  ;;  %v1267_v51 = vsel %vm931_vm0, %v2392_v22, %v2386_v4 }
  0xf1   : > { %2141 = vmatprep.subr.bf16.mxu1 %v2140_v61  ;;  %v2208_v61 = vpack.c.bf16 %v1245_v55, %v1243_v54  ;;  %v2224_v2 = vpack.c.bf16 %v1365_v57, %v1363_v56  ;;  %v1378_v55 = vld [vmem:[#allocation2 + $0xe80] sm:$0xff]  ;;  %v1532_v57 = vld [vmem:[#allocation2 + $0x1010] sm:$0xff]  ;;  %v1387_v4 = vld [vmem:[#allocation2 + $0xec8] sm:$0xff] }
  0xf2   : > { %v1530_v56 = vld [vmem:[#allocation2 + $0x1000] sm:$0xff]  ;;  %v2248_v20 = vpack.c.bf16 %v1389_v15, %v1387_v4  ;;  %v1393_v27 = vld [vmem:[#allocation2 + $0xef8] sm:$0xff]  ;;  %v1551_v22 = vld [vmem:[#allocation2 + $0x10a8] sm:$0xff] }
  0xf3   : > { %2191 = vmatpush1.bf16.msra.mxu0 %v2190_v46  ;;  %v1249_v46 = vld [vmem:[#allocation2 + $0xdb8] sm:$0xff]  ;;  %v2290_v0 = vpack.c.bf16 %v1532_v57, %v1530_v56  ;;  %v1407_v15 = vld [vmem:[#allocation2 + $0xf68] sm:$0xff] }
  0xf4   : > { %2143 = vmatpush1.bf16.msra.mxu1 %v2142_v6  ;;  %2193 = vmatprep.subr.bf16.mxu0 %v2192_v7  ;;  %v2662_v6 = vpop.permute.xlu1 %2394  ;;  %v1367_v7 = vld [vmem:[#allocation2 + $0xe28] sm:$0xff]  ;;  %v2212_v14 = vpack.c.bf16 %v1249_v46, %v1247_v5  ;;  %v1382_v46 = vld [vmem:[#allocation2 + $0xea0] sm:$0xff]  ;;  %v1561_v4 = vld [vmem:[#allocation2 + $0x10f8] sm:$0xff] }
  0xf5   : > { %2145 = vmatprep.subr.bf16.mxu1 %v2144_v12  ;;  %v2397_v9 = vunpack.i.h.bf16 %v2662_v6  ;;  %v2396_v10 = vunpack.i.l.bf16 %v2662_v6  ;;  %v1099_v12 = vsel %vm931_vm0, %v2391_v59, %v2381_v24  ;;  %v1380_v59 = vld [vmem:[#allocation2 + $0xe90] sm:$0xff] }
  0xf6   : > { %v2242_v3 = vpack.c.bf16 %v1380_v59, %v1378_v55  ;;  %v1550_v59 = vld [vmem:[#allocation2 + $0x10a0] sm:$0xff] }
  0xf7   : > { %2195 = vmatpush1.bf16.msra.mxu0 %v2194_v17  ;;  %v2228_v17 = vpack.c.bf16 %v1369_v8, %v1367_v7  ;;  %v1534_v7 = vld [vmem:[#allocation2 + $0x1020] sm:$0xff]  ;;  %v1536_v8 = vld [vmem:[#allocation2 + $0x1030] sm:$0xff] }
  0xf8   : > { %2147 = vmatpush1.bf16.msra.mxu1 %v2146_v18  ;;  %2197 = vmatprep.subr.bf16.mxu0 %v2196_v39  ;;  %v1368_v18 = vld [vmem:[#allocation2 + $0xe30] sm:$0xff]  ;;  %v1251_v39 = vld [vmem:[#allocation2 + $0xdc8] sm:$0xff] }
  0xf9   : > { %2149 = vmatprep.subr.bf16.mxu1 %v2148_v25  ;;  %v1436_v25 = vsel %vm931_vm0, %v2396_v10, %v2397_v9  ;;  %v2230_v24 = vpack.c.bf16 %v1368_v18, %v1366_v21  ;;  %v2216_v26 = vpack.c.bf16 %v1253_v19, %v1251_v39  ;;  %v2294_v21 = vpack.c.bf16 %v1536_v8, %v1534_v7  ;;  %v1386_v39 = vld [vmem:[#allocation2 + $0xec0] sm:$0xff] }
  0xfa   : > { %v1538_v19 = vld [vmem:[#allocation2 + $0x1040] sm:$0xff] }
  0xfb   : > { %2199 = vmatpush1.bf16.msra.mxu0 %v2198_v31  ;;  %v1372_v31 = vld [vmem:[#allocation2 + $0xe50] sm:$0xff]  ;;  %v2298_v28 = vpack.c.bf16 %v1540_v23, %v1538_v19  ;;  %v1402_v8 = vld [vmem:[#allocation2 + $0xf40] sm:$0xff] }
  0xfc   : > { %2151 = vmatpush1.bf16.msra.mxu1 %v2150_v33  ;;  %2201 = vmatprep.subr.bf16.mxu0 %v2200_v34  ;;  %v1255_v33 = vld [vmem:[#allocation2 + $0xde8] sm:$0xff]  ;;  %v1257_v34 = vld [vmem:[#allocation2 + $0xdf8] sm:$0xff]  ;;  %v1558_v19 = vld [vmem:[#allocation2 + $0x10e0] sm:$0xff] }
  0xfd   : > { %2153 = vmatprep.subr.bf16.mxu1 %v2152_v38  ;;  %v2234_v38 = vpack.c.bf16 %v1372_v31, %v1370_v29  ;;  %v2220_v40 = vpack.c.bf16 %v1257_v34, %v1255_v33  ;;  %v1390_v31 = vld [vmem:[#allocation2 + $0xee0] sm:$0xff]  ;;  %v1544_v34 = vld [vmem:[#allocation2 + $0x1070] sm:$0xff] }
  0xfe   : > { %v1542_v33 = vld [vmem:[#allocation2 + $0x1060] sm:$0xff]  ;;  %v1560_v23 = vld [vmem:[#allocation2 + $0x10f0] sm:$0xff] }
  0xff   : > { %2203 = vmatpush1.bf16.msra.mxu0 %v2202_v45  ;;  %v1376_v45 = vld [vmem:[#allocation2 + $0xe70] sm:$0xff] }
 0x100   : > { %2155 = vmatpush1.bf16.msra.mxu1 %v2154_v47  ;;  %2205 = vmatprep.subr.bf16.mxu0 %v2204_v48  ;;  %v1531_v47 = vld [vmem:[#allocation2 + $0x1008] sm:$0xff]  ;;  %v1533_v48 = vld [vmem:[#allocation2 + $0x1018] sm:$0xff]  ;;  %v2238_v53 = vpack.c.bf16 %v1376_v45, %v1374_v43  ;;  %v2254_v43 = vpack.c.bf16 %v1392_v36, %v1390_v31  ;;  %v1394_v45 = vld [vmem:[#allocation2 + $0xf00] sm:$0xff] }
 0x101   : > { %2157 = vmatprep.subr.bf16.mxu1 %v2156_v52  ;;  %v2222_v52 = vpack.c.bf16 %v1256_v42, %v1254_v41  ;;  %v2288_v54 = vpack.c.bf16 %v1533_v48, %v1531_v47  ;;  %v1397_v41 = vld [vmem:[#allocation2 + $0xf18] sm:$0xff]  ;;  %v2302_v42 = vpack.c.bf16 %v1544_v34, %v1542_v33  ;;  %v1546_v47 = vld [vmem:[#allocation2 + $0x1080] sm:$0xff]  ;;  %v1548_v48 = vld [vmem:[#allocation2 + $0x1090] sm:$0xff] }
 0x102   : > { %v2306_v55 = vpack.c.bf16 %v1548_v48, %v1546_v47  ;;  %v1410_v31 = vld [vmem:[#allocation2 + $0xf80] sm:$0xff]  ;;  %v1564_v34 = vld [vmem:[#allocation2 + $0x1110] sm:$0xff] }
 0x103   : > { %2207 = vmatpush1.bf16.msra.mxu0 %v2206_v58  ;;  %v2240_v58 = vpack.c.bf16 %v1381_v50, %v1379_v49  ;;  %v1396_v50 = vld [vmem:[#allocation2 + $0xf10] sm:$0xff]  ;;  %v1562_v33 = vld [vmem:[#allocation2 + $0x1100] sm:$0xff] }
 0x104   : > { %2159 = vmatpush1.bf16.msra.mxu1 %v2158_v60  ;;  %2209 = vmatprep.subr.bf16.mxu0 %v2208_v61  ;;  %v1535_v60 = vld [vmem:[#allocation2 + $0x1028] sm:$0xff]  ;;  %v1537_v61 = vld [vmem:[#allocation2 + $0x1038] sm:$0xff]  ;;  %v2258_v56 = vpack.c.bf16 %v1396_v50, %v1394_v45  ;;  %v1412_v36 = vld [vmem:[#allocation2 + $0xf90] sm:$0xff] }
 0x105   : > { %2225 = vmatprep.subr.bf16.mxu1 %v2224_v2  ;;  %v2676_v2 = vpop.permute.xlu0 %2399  ;;  %v2292_v5 = vpack.c.bf16 %v1537_v61, %v1535_v60  ;;  %v1552_v60 = vld [vmem:[#allocation2 + $0x10b0] sm:$0xff]  ;;  %v1414_v45 = vld [vmem:[#allocation2 + $0xfa0] sm:$0xff] }
 0x106   : > { %v2402_v9 = vunpack.i.h.bf16 %v2676_v2  ;;  %v1566_v47 = vld [vmem:[#allocation2 + $0x1120] sm:$0xff]  ;;  %v1568_v48 = vld [vmem:[#allocation2 + $0x1130] sm:$0xff] }
 0x107   : > { %1168 = vmatmul.mubr.f32.vlgmr.msra.gmra.mrb[6].mxu1 %v1099_v12  ;;  %2211 = vmatpush1.bf16.msra.mxu0 %v2210_v11  ;;  %v2401_v11 = vunpack.i.l.bf16 %v2676_v2  ;;  %v2244_v12 = vpack.c.bf16 %v1385_v63, %v1383_v62  ;;  %v1400_v62 = vld [vmem:[#allocation2 + $0xf30] sm:$0xff]  ;;  %v1555_v63 = vld [vmem:[#allocation2 + $0x10c8] sm:$0xff] }
 0x108   : > { %2227 = vmatpush1.bf16.msra.mxu1 %v2226_v13  ;;  %2213 = vmatprep.subr.bf16.mxu0 %v2212_v14  ;;  %v1384_v13 = vld [vmem:[#allocation2 + $0xeb0] sm:$0xff]  ;;  %v1541_v14 = vld [vmem:[#allocation2 + $0x1058] sm:$0xff] }
 0x109   : > { %2229 = vmatprep.subr.bf16.mxu1 %v2228_v17  ;;  %1503 = vmatprep.mubr.f32.mxu1 %v1436_v25  ;;  %v1604_v16 = vsel %vm931_vm0, %v2401_v11, %v2402_v9  ;;  %v2246_v17 = vpack.c.bf16 %v1384_v13, %v1382_v46  ;;  %v2296_v18 = vpack.c.bf16 %v1541_v14, %v1539_v1  ;;  %v1388_v25 = vld [vmem:[#allocation2 + $0xed0] sm:$0xff]  ;;  %v1554_v9 = vld [vmem:[#allocation2 + $0x10c0] sm:$0xff]  ;;  %v1559_v14 = vld [vmem:[#allocation2 + $0x10e8] sm:$0xff] }
 0x10a   : > { %v2250_v29 = vpack.c.bf16 %v1388_v25, %v1386_v39  ;;  %v1404_v1 = vld [vmem:[#allocation2 + $0xf50] sm:$0xff]  ;;  %v1406_v39 = vld [vmem:[#allocation2 + $0xf60] sm:$0xff] }
 0x10b   : > { %2215 = vmatpush1.bf16.msra.mxu0 %v2214_v32  ;;  %v1543_v32 = vld [vmem:[#allocation2 + $0x1068] sm:$0xff]  ;;  %v1408_v25 = vld [vmem:[#allocation2 + $0xf70] sm:$0xff] }
 0x10c   : > { %2231 = vmatpush1.bf16.msra.mxu1 %v2230_v24  ;;  %2217 = vmatprep.subr.bf16.mxu0 %v2216_v26  ;;  %v1545_v24 = vld [vmem:[#allocation2 + $0x1078] sm:$0xff]  ;;  %v1391_v26 = vld [vmem:[#allocation2 + $0xee8] sm:$0xff]  ;;  %v1416_v50 = vld [vmem:[#allocation2 + $0xfb0] sm:$0xff] }
 0x10d   : > { %2233 = vmatprep.subr.bf16.mxu1 %v2232_v30  ;;  %v2300_v30 = vpack.c.bf16 %v1545_v24, %v1543_v32  ;;  %v2252_v35 = vpack.c.bf16 %v1393_v27, %v1391_v26  ;;  %v1563_v32 = vld [vmem:[#allocation2 + $0x1108] sm:$0xff]  ;;  %v1565_v24 = vld [vmem:[#allocation2 + $0x1118] sm:$0xff] }
 0x10e   : > { %v1411_v26 = vld [vmem:[#allocation2 + $0xf88] sm:$0xff]  ;;  %v1413_v27 = vld [vmem:[#allocation2 + $0xf98] sm:$0xff] }
 0x10f   : > { %2219 = vmatpush1.bf16.msra.mxu0 %v2218_v37  ;;  %v1547_v37 = vld [vmem:[#allocation2 + $0x1088] sm:$0xff] }
 0x110   : > { %2235 = vmatpush1.bf16.msra.mxu1 %v2234_v38  ;;  %2221 = vmatprep.subr.bf16.mxu0 %v2220_v40  ;;  %v1549_v38 = vld [vmem:[#allocation2 + $0x1098] sm:$0xff]  ;;  %v1395_v40 = vld [vmem:[#allocation2 + $0xf08] sm:$0xff] }
 0x111   : > { %2237 = vmatprep.subr.bf16.mxu1 %v2236_v44  ;;  %v2304_v44 = vpack.c.bf16 %v1549_v38, %v1547_v37  ;;  %v2256_v49 = vpack.c.bf16 %v1397_v41, %v1395_v40  ;;  %v1567_v37 = vld [vmem:[#allocation2 + $0x1128] sm:$0xff]  ;;  %v1569_v38 = vld [vmem:[#allocation2 + $0x1138] sm:$0xff] }
 0x112   : > { %v1415_v40 = vld [vmem:[#allocation2 + $0xfa8] sm:$0xff]  ;;  %v1417_v41 = vld [vmem:[#allocation2 + $0xfb8] sm:$0xff] }
 0x113   : > { %2223 = vmatpush1.bf16.msra.mxu0 %v2222_v52  ;;  %v1553_v52 = vld [vmem:[#allocation2 + $0x10b8] sm:$0xff] }
 0x114   : > { %2239 = vmatpush1.bf16.msra.mxu1 %v2238_v53  ;;  %2289 = vmatprep.subr.bf16.mxu0 %v2288_v54  ;;  %v1399_v53 = vld [vmem:[#allocation2 + $0xf28] sm:$0xff]  ;;  %v1401_v54 = vld [vmem:[#allocation2 + $0xf38] sm:$0xff]  ;;  %v2308_v57 = vpack.c.bf16 %v1553_v52, %v1551_v22 }
 0x115   : > { %2241 = vmatprep.subr.bf16.mxu1 %v2240_v58  ;;  %v1398_v58 = vld [vmem:[#allocation2 + $0xf20] sm:$0xff]  ;;  %v2260_v61 = vpack.c.bf16 %v1401_v54, %v1399_v53  ;;  %v1571_v22 = vld [vmem:[#allocation2 + $0x1148] sm:$0xff]  ;;  %v1573_v52 = vld [vmem:[#allocation2 + $0x1158] sm:$0xff] }
 0x116   : > { %1336 = vmatmul.mubr.f32.vlgmr.msra.gmra.mrb[6].mxu0 %v1267_v51  ;;  %v1557_v51 = vld [vmem:[#allocation2 + $0x10d8] sm:$0xff]  ;;  %v2262_v46 = vpack.c.bf16 %v1400_v62, %v1398_v58  ;;  %v1419_v53 = vld [vmem:[#allocation2 + $0xfc8] sm:$0xff]  ;;  %v1418_v58 = vld [vmem:[#allocation2 + $0xfc0] sm:$0xff] }
 0x117   : > { %2291 = vmatpush1.bf16.msra.mxu0 %v2290_v0  ;;  %1671 = vmatprep.mubr.f32.mxu0 %v1604_v16  ;;  %v1403_v0 = vld [vmem:[#allocation2 + $0xf48] sm:$0xff]  ;;  %v2312_v7 = vpack.c.bf16 %v1557_v51, %v1555_v63  ;;  %v1409_v16 = vld [vmem:[#allocation2 + $0xf78] sm:$0xff]  ;;  %v1420_v62 = vld [vmem:[#allocation2 + $0xfd0] sm:$0xff] }
 0x118   : > { %2243 = vmatpush1.bf16.msra.mxu1 %v2242_v3  ;;  %2293 = vmatprep.subr.bf16.mxu0 %v2292_v5  ;;  %v1405_v3 = vld [vmem:[#allocation2 + $0xf58] sm:$0xff]  ;;  %v2310_v5 = vpack.c.bf16 %v1552_v60, %v1550_v59  ;;  %v1570_v59 = vld [vmem:[#allocation2 + $0x1140] sm:$0xff]  ;;  %v1572_v60 = vld [vmem:[#allocation2 + $0x1150] sm:$0xff] }
 0x119   : > { %2245 = vmatprep.subr.bf16.mxu1 %v2244_v12  ;;  %v1556_v12 = vld [vmem:[#allocation2 + $0x10d0] sm:$0xff]  ;;  %v2264_v13 = vpack.c.bf16 %v1405_v3, %v1403_v0  ;;  %v1421_v54 = vld [vmem:[#allocation2 + $0xfd8] sm:$0xff]  ;;  %v1575_v63 = vld [vmem:[#allocation2 + $0x1168] sm:$0xff] }
 0x11a   : > { %v1577_v51 = vld [vmem:[#allocation2 + $0x1178] sm:$0xff]  ;;  %v1423_v0 = vld [vmem:[#allocation2 + $0xfe8] sm:$0xff] }
 0x11b   : > { %2295 = vmatpush1.bf16.msra.mxu0 %v2294_v21  ;;  %v2314_v21 = vpack.c.bf16 %v1556_v12, %v1554_v9  ;;  %v1425_v3 = vld [vmem:[#allocation2 + $0xff8] sm:$0xff]  ;;  %v1574_v9 = vld [vmem:[#allocation2 + $0x1160] sm:$0xff]  ;;  %v1576_v12 = vld [vmem:[#allocation2 + $0x1170] sm:$0xff] }
 0x11c   : > { %2247 = vmatpush1.bf16.msra.mxu1 %v2246_v17  ;;  %2297 = vmatprep.subr.bf16.mxu0 %v2296_v18  ;;  %v2266_v17 = vpack.c.bf16 %v1404_v1, %v1402_v8  ;;  %v2316_v18 = vpack.c.bf16 %v1561_v4, %v1559_v14  ;;  %v1422_v8 = vld [vmem:[#allocation2 + $0xfe0] sm:$0xff]  ;;  %v2284_v1 = vpack.c.bf16 %v1425_v3, %v1423_v0  ;;  %v1424_v14 = vld [vmem:[#allocation2 + $0xff0] sm:$0xff]  ;;  %v1579_v4 = vld [vmem:[#allocation2 + $0x1188] sm:$0xff] }
 0x11d   : > { %2249 = vmatprep.subr.bf16.mxu1 %v2248_v20  ;;  %v2268_v20 = vpack.c.bf16 %v1409_v16, %v1407_v15  ;;  %v1581_v15 = vld [vmem:[#allocation2 + $0x1198] sm:$0xff]  ;;  %v2334_v16 = vpack.c.bf16 %v1576_v12, %v1574_v9 }
 0x11f   : > { %2299 = vmatpush1.bf16.msra.mxu0 %v2298_v28  ;;  %v2318_v28 = vpack.c.bf16 %v1560_v23, %v1558_v19  ;;  %v1580_v19 = vld [vmem:[#allocation2 + $0x1190] sm:$0xff] }
 0x120   : > { %2251 = vmatpush1.bf16.msra.mxu1 %v2250_v29  ;;  %2301 = vmatprep.subr.bf16.mxu0 %v2300_v30  ;;  %v2270_v29 = vpack.c.bf16 %v1408_v25, %v1406_v39  ;;  %v2320_v30 = vpack.c.bf16 %v1565_v24, %v1563_v32  ;;  %v1578_v39 = vld [vmem:[#allocation2 + $0x1180] sm:$0xff]  ;;  %v1585_v25 = vld [vmem:[#allocation2 + $0x11b8] sm:$0xff] }
 0x121   : > { %2253 = vmatprep.subr.bf16.mxu1 %v2252_v35  ;;  %v2272_v35 = vpack.c.bf16 %v1413_v27, %v1411_v26 }
 0x123   : > { %2303 = vmatpush1.bf16.msra.mxu0 %v2302_v42  ;;  %v2322_v42 = vpack.c.bf16 %v1564_v34, %v1562_v33  ;;  %v1582_v33 = vld [vmem:[#allocation2 + $0x11a0] sm:$0xff]  ;;  %v1584_v34 = vld [vmem:[#allocation2 + $0x11b0] sm:$0xff] }
 0x124   : > { %2255 = vmatpush1.bf16.msra.mxu1 %v2254_v43  ;;  %2305 = vmatprep.subr.bf16.mxu0 %v2304_v44  ;;  %v2274_v43 = vpack.c.bf16 %v1412_v36, %v1410_v31  ;;  %v2324_v44 = vpack.c.bf16 %v1569_v38, %v1567_v37  ;;  %v1589_v36 = vld [vmem:[#allocation2 + $0x11d8] sm:$0xff]  ;;  %v2342_v37 = vpack.c.bf16 %v1584_v34, %v1582_v33 }
 0x125   : > { %2257 = vmatprep.subr.bf16.mxu1 %v2256_v49  ;;  %v2276_v49 = vpack.c.bf16 %v1417_v41, %v1415_v40  ;;  %v1586_v40 = vld [vmem:[#allocation2 + $0x11c0] sm:$0xff]  ;;  %v1588_v41 = vld [vmem:[#allocation2 + $0x11d0] sm:$0xff] }
 0x126   : > { %v2346_v6 = vpack.c.bf16 %v1588_v41, %v1586_v40 }
 0x127   : > { %2307 = vmatpush1.bf16.msra.mxu0 %v2306_v55  ;;  %v2326_v55 = vpack.c.bf16 %v1568_v48, %v1566_v47 }
 0x128   : > { %2259 = vmatpush1.bf16.msra.mxu1 %v2258_v56  ;;  %2309 = vmatprep.subr.bf16.mxu0 %v2308_v57  ;;  %v2278_v56 = vpack.c.bf16 %v1416_v50, %v1414_v45  ;;  %v2328_v57 = vpack.c.bf16 %v1573_v52, %v1571_v22  ;;  %v1592_v45 = vld [vmem:[#allocation2 + $0x11f0] sm:$0xff] }
 0x129   : > { %2261 = vmatprep.subr.bf16.mxu1 %v2260_v61  ;;  %v2280_v61 = vpack.c.bf16 %v1421_v54, %v1419_v53 }
 0x12b   : > { %2311 = vmatpush1.bf16.msra.mxu0 %v2310_v5  ;;  %v2330_v5 = vpack.c.bf16 %v1572_v60, %v1570_v59 }
 0x12c   : > { %2263 = vmatpush1.bf16.msra.mxu1 %v2262_v46  ;;  %2313 = vmatprep.subr.bf16.mxu0 %v2312_v7  ;;  %v2282_v46 = vpack.c.bf16 %v1420_v62, %v1418_v58  ;;  %v2332_v7 = vpack.c.bf16 %v1577_v51, %v1575_v63 }
 0x12d   : > { %2265 = vmatprep.subr.bf16.mxu1 %v2264_v13  ;;  %v2405_v13 = vpop.permute.xlu1 %2404 }
 0x12e   : > { %v2407_v47 = vunpack.i.h.bf16 %v2405_v13 }
 0x12f   : > { %2315 = vmatpush1.bf16.msra.mxu0 %v2314_v21  ;;  %v2406_v21 = vunpack.i.l.bf16 %v2405_v13 }
 0x130   : > { %2267 = vmatpush1.bf16.msra.mxu1 %v2266_v17  ;;  %2317 = vmatprep.subr.bf16.mxu0 %v2316_v18  ;;  %v2286_v17 = vpack.c.bf16 %v1424_v14, %v1422_v8  ;;  %v2336_v18 = vpack.c.bf16 %v1581_v15, %v1579_v4 }
 0x131   : > { %2269 = vmatprep.subr.bf16.mxu1 %v2268_v20  ;;  %v1583_v20 = vld [vmem:[#allocation2 + $0x11a8] sm:$0xff] }
 0x132   : > { %v2340_v31 = vpack.c.bf16 %v1585_v25, %v1583_v20 }
 0x133   : > { %2319 = vmatpush1.bf16.msra.mxu0 %v2318_v28  ;;  %v2338_v28 = vpack.c.bf16 %v1580_v19, %v1578_v39 }
 0x134   : > { %2271 = vmatpush1.bf16.msra.mxu1 %v2270_v29  ;;  %2321 = vmatprep.subr.bf16.mxu0 %v2320_v30  ;;  %v1435_v30 = vsel %vm931_vm0, %v2406_v21, %v2396_v10 }
 0x135   : > { %2273 = vmatprep.subr.bf16.mxu1 %v2272_v35  ;;  %v1587_v35 = vld [vmem:[#allocation2 + $0x11c8] sm:$0xff] }
 0x136   : > { %v2344_v38 = vpack.c.bf16 %v1589_v36, %v1587_v35 }
 0x137   : > { %2323 = vmatpush1.bf16.msra.mxu0 %v2322_v42  ;;  %v1591_v42 = vld [vmem:[#allocation2 + $0x11e8] sm:$0xff] }
 0x138   : > { %2275 = vmatpush1.bf16.msra.mxu1 %v2274_v43  ;;  %2325 = vmatprep.subr.bf16.mxu0 %v2324_v44  ;;  %v1593_v43 = vld [vmem:[#allocation2 + $0x11f8] sm:$0xff]  ;;  %v1590_v44 = vld [vmem:[#allocation2 + $0x11e0] sm:$0xff] }
 0x139   : > { %2277 = vmatprep.subr.bf16.mxu1 %v2276_v49  ;;  %v2348_v10 = vpack.c.bf16 %v1593_v43, %v1591_v42  ;;  %v2350_v48 = vpack.c.bf16 %v1592_v45, %v1590_v44  ;;  %v1603_v49 = vsel %vm931_vm0, %v2407_v47, %v2401_v11 }
 0x13b   : > { %2327 = vmatpush1.bf16.msra.mxu0 %v2326_v55 }
 0x13c   : > { %2279 = vmatpush1.bf16.msra.mxu1 %v2278_v56  ;;  %2329 = vmatprep.subr.bf16.mxu0 %v2328_v57 }
 0x13d   : > { %2281 = vmatprep.subr.bf16.mxu1 %v2280_v61 }
 0x13f   : > { %2331 = vmatpush1.bf16.msra.mxu0 %v2330_v5 }
 0x140   : > { %2283 = vmatpush1.bf16.msra.mxu1 %v2282_v46  ;;  %2333 = vmatprep.subr.bf16.mxu0 %v2332_v7 }
 0x141   : > { %v2683_v23 = vpop.f32.mrb[0].mxu0  ;;  %2285 = vmatprep.subr.bf16.mxu1 %v2284_v1 }
 0x142   : > { %v2685_v32 = vpop.f32.mrb[0].mxu1  ;;  %v2687_v24 = vpop.f32.mrb[1].mxu0 }
 0x143   : > { %v2689_v26 = vpop.f32.mrb[1].mxu1  ;;  %2335 = vmatpush1.bf16.msra.mxu0 %v2334_v16  ;;  %v310_v27 = vmax.f32 %v2683_v23, %v2687_v24 }
 0x144   : > { %2287 = vmatpush1.bf16.msra.mxu1 %v2286_v17  ;;  %v464_v29 = vmax.f32 %v2685_v32, %v2689_v26  ;;  %2337 = vmatprep.subr.bf16.mxu0 %v2336_v18 }
 0x145   : > { %311 = vmax.xlane.f32.xlu0 %v310_v27 }
 0x146   : > { %465 = vmax.xlane.f32.xlu1 %v464_v29 }
 0x147   : > { %1504 = vmatmul.mubr.f32.vlgmr.msra.gmra.mrb[8].mxu1 %v1435_v30  ;;  %2339 = vmatpush1.bf16.msra.mxu0 %v2338_v28 }
 0x148   : > { %2341 = vmatprep.subr.bf16.mxu0 %v2340_v31 }
 0x14b   : > { %2343 = vmatpush1.bf16.msra.mxu0 %v2342_v37 }
 0x14c   : > { %2345 = vmatprep.subr.bf16.mxu0 %v2344_v38 }
 0x14f   : > { %2347 = vmatpush1.bf16.msra.mxu0 %v2346_v6 }
 0x150   : > { %2349 = vmatprep.subr.bf16.mxu0 %v2348_v10 }
 0x153   : > { %2351 = vmatpush1.bf16.msra.mxu0 %v2350_v48 }
 0x156   : > { %1672 = vmatmul.mubr.f32.vlgmr.msra.gmra.mrb[8].mxu0 %v1603_v49 }
 0x181   : > { %v613_v50 = vpop.f32.mrb[2].mxu0 }
 0x182   : > { %v615_v22 = vpop.f32.mrb[3].mxu0  ;;  %v2701_v52 = vpop.f32.mrb[2].mxu1 }
 0x183   : > { %v618_v53 = vmax.f32 %v613_v50, %v615_v22  ;;  %v2703_v54 = vpop.f32.mrb[3].mxu1 }
 0x184   : > { %v772_v55 = vmax.f32 %v2701_v52, %v2703_v54 }
 0x185   : > { %619 = vmax.xlane.f32.xlu0 %v618_v53 }
 0x189   : > { %773 = vmax.xlane.f32.xlu0 %v772_v55 }
 0x19a   : > { %v926_v56 = vpop.f32.mrb[4].mxu1 }
 0x19b   : > { %v928_v57 = vpop.f32.mrb[5].mxu1 }
 0x1a9   : > { %v1001_v58 = vpop.f32.mrb[4].mxu0 }
 0x1aa   : > { %v2707_v59 = vadd.f32 %v1001_v58, %v926_v56  ;;  %v1003_v2 = vpop.f32.mrb[5].mxu0 }
 0x1ab   : > { %v2709_v11 = vadd.f32 %v1003_v2, %v928_v57 }
 0x1ad   : > { %v1006_v60 = vmax.f32 %v2707_v59, %v2709_v11 }
 0x1af   : > { %1007 = vmax.xlane.f32.xlu1 %v1006_v60 }
 0x1d2   : > { %v312_v61 = vpop.xlane.xlu0 %311 }
 0x1d3   : > { %v466_v62 = vpop.xlane.xlu1 %465  ;;  %v313_v63 = vmul.f32 0.5, %v312_v61 }
 0x1d4   : > { %v467_v51 = vmul.f32 0.5, %v466_v62 }
 0x1d5   : > { %v314_v0 = vsub.f32 %v2683_v23, %v313_v63  ;;  %v315_v3 = vsub.f32 %v2687_v24, %v313_v63 }
 0x1d6   : > { %v468_v5 = vsub.f32 %v2685_v32, %v467_v51  ;;  %v469_v46 = vsub.f32 %v2689_v26, %v467_v51 }
 0x1d7   : > { %v316_v7 = vmul.f32 0.5, %v314_v0  ;;  %v317_v12 = vmul.f32 0.5, %v315_v3 }
 0x1d8   : > { %v470_v8 = vmul.f32 0.5, %v468_v5  ;;  %v471_v9 = vmul.f32 0.5, %v469_v46 }
 0x1d9   : > { %2408 = vtanh.f32 %v316_v7 }
 0x1da   : > { %2410 = vtanh.f32 %v470_v8  ;;  %v2717_v13 = vpop.f32.mrb[6].mxu1 }
 0x1db   : > { %2412 = vtanh.f32 %v471_v9  ;;  %v2719_v1 = vpop.f32.mrb[7].mxu1 }
 0x1dc   : > { %2414 = vtanh.f32 %v317_v12  ;;  %v1174_v14 = vmax.f32 %v2717_v13, %v2719_v1 }
 0x1de   : > { %1175 = vmax.xlane.f32.xlu0 %v1174_v14 }
 0x1e3   : > { %v2409_v4 = vpop.eup %2408 }
 0x1e4   : > { %v2411_v15 = vpop.eup %2410  ;;  %v320_v16 = vmul.f32 0.5, %v2409_v4 }
 0x1e5   : > { %v2413_v21 = vpop.eup %2412  ;;  %v474_v17 = vmul.f32 0.5, %v2411_v15 }
 0x1e6   : > { %v2415_v18 = vpop.eup %2414  ;;  %v475_v39 = vmul.f32 0.5, %v2413_v21  ;;  %v322_v19 = vadd.f32 0.5, %v320_v16 }
 0x1e7   : > { %v476_v23 = vadd.f32 0.5, %v474_v17  ;;  %v321_v20 = vmul.f32 0.5, %v2415_v18 }
 0x1e8   : > { %v477_v25 = vadd.f32 0.5, %v475_v39  ;;  %324 = vst [vmem:[%s2559_s30] sm:$0xff] %v322_v19 }
 0x1e9   : > { %478 = vst [vmem:[%s2559_s30 + $0x10] sm:$0xff] %v476_v23  ;;  %v323_v32 = vadd.f32 0.5, %v321_v20  ;;  %v2725_v24 = vpop.f32.mrb[6].mxu0 }
 0x1ea   : > { %479 = vst [vmem:[%s2559_s30 + $0x18] sm:$0xff] %v477_v25  ;;  %v2728_v26 = vpop.f32.mrb[7].mxu0 }
 0x1eb   : > { %325 = vst [vmem:[%s2559_s30 + $0x8] sm:$0xff] %v323_v32  ;;  %v1342_v27 = vmax.f32 %v2725_v24, %v2728_v26 }
 0x1ed   : > { %1343 = vmax.xlane.f32.xlu1 %v1342_v27 }
 0x212   : > { %v620_v28 = vpop.xlane.xlu0 %619 }
 0x213   : > { %v621_v29 = vmul.f32 0.5, %v620_v28 }
 0x215   : > { %v622_v30 = vsub.f32 %v613_v50, %v621_v29  ;;  %v623_v31 = vsub.f32 %v615_v22, %v621_v29 }
 0x216   : > { %v774_v33 = vpop.xlane.xlu0 %773 }
 0x217   : > { %v624_v34 = vmul.f32 0.5, %v622_v30  ;;  %v625_v35 = vmul.f32 0.5, %v623_v31  ;;  %v775_v36 = vmul.f32 0.5, %v774_v33 }
 0x219   : > { %2416 = vtanh.f32 %v624_v34  ;;  %v776_v37 = vsub.f32 %v2701_v52, %v775_v36  ;;  %v777_v38 = vsub.f32 %v2703_v54, %v775_v36 }
 0x21a   : > { %2418 = vtanh.f32 %v625_v35  ;;  %v2735_v40 = vpop.f32.mrb[8].mxu1 }
 0x21b   : > { %v778_v41 = vmul.f32 0.5, %v776_v37  ;;  %v779_v42 = vmul.f32 0.5, %v777_v38  ;;  %v2737_v43 = vpop.f32.mrb[9].mxu1 }
 0x21c   : > { %v1510_v6 = vmax.f32 %v2735_v40, %v2737_v43 }
 0x21d   : > { %2420 = vtanh.f32 %v778_v41 }
 0x21e   : > { %2422 = vtanh.f32 %v779_v42  ;;  %1511 = vmax.xlane.f32.xlu0 %v1510_v6 }
 0x223   : > { %v2417_v10 = vpop.eup %2416 }
 0x224   : > { %v2419_v44 = vpop.eup %2418  ;;  %v628_v45 = vmul.f32 0.5, %v2417_v10 }
 0x225   : > { %v629_v47 = vmul.f32 0.5, %v2419_v44 }
 0x226   : > { %v630_v48 = vadd.f32 0.5, %v628_v45 }
 0x227   : > { %v2421_v49 = vpop.eup %2420  ;;  %v631_v50 = vadd.f32 0.5, %v629_v47 }
 0x228   : > { %v2423_v22 = vpop.eup %2422  ;;  %632 = vst [vmem:[%s2559_s30 + $0x20] sm:$0xff] %v630_v48  ;;  %v782_v52 = vmul.f32 0.5, %v2421_v49 }
 0x229   : > { %633 = vst [vmem:[%s2559_s30 + $0x28] sm:$0xff] %v631_v50  ;;  %v783_v53 = vmul.f32 0.5, %v2423_v22  ;;  %v2743_v54 = vpop.f32.mrb[8].mxu0 }
 0x22a   : > { %v784_v55 = vadd.f32 0.5, %v782_v52  ;;  %v2745_v56 = vpop.f32.mrb[9].mxu0 }
 0x22b   : > { %v785_v57 = vadd.f32 0.5, %v783_v53  ;;  %v1678_v58 = vmax.f32 %v2743_v54, %v2745_v56 }
 0x22c   : > { %786 = vst [vmem:[%s2559_s30 + $0x40] sm:$0xff] %v784_v55 }
 0x22d   : > { %787 = vst [vmem:[%s2559_s30 + $0x48] sm:$0xff] %v785_v57  ;;  %1679 = vmax.xlane.f32.xlu1 %v1678_v58 }
 0x23c   : > { %v1008_v2 = vpop.xlane.xlu1 %1007 }
 0x23d   : > { %v1009_v60 = vmul.f32 0.5, %v1008_v2 }
 0x23f   : > { %v1010_v61 = vsub.f32 %v2707_v59, %v1009_v60  ;;  %v1011_v62 = vsub.f32 %v2709_v11, %v1009_v60 }
 0x241   : > { %v1012_v63 = vmul.f32 0.5, %v1010_v61  ;;  %v1013_v51 = vmul.f32 0.5, %v1011_v62 }
 0x243   : > { %2424 = vtanh.f32 %v1012_v63 }
 0x244   : > { %2426 = vtanh.f32 %v1013_v51 }
 0x24d   : > { %v2425_v0 = vpop.eup %2424 }
 0x24e   : > { %v2427_v3 = vpop.eup %2426  ;;  %v1016_v5 = vmul.f32 0.5, %v2425_v0 }
 0x24f   : > { %v1017_v46 = vmul.f32 0.5, %v2427_v3 }
 0x250   : > { %v1018_v7 = vadd.f32 0.5, %v1016_v5 }
 0x251   : > { %v1019_v8 = vadd.f32 0.5, %v1017_v46 }
 0x252   : > { %1020 = vst [vmem:[%s2559_s30 + $0x50] sm:$0xff] %v1018_v7 }
 0x253   : > { %1021 = vst [vmem:[%s2559_s30 + $0x58] sm:$0xff] %v1019_v8 }
 0x26b   : > { %v1176_v9 = vpop.xlane.xlu0 %1175 }
 0x26c   : > { %v1177_v12 = vmul.f32 0.5, %v1176_v9 }
 0x26e   : > { %v1178_v14 = vsub.f32 %v2717_v13, %v1177_v12  ;;  %v1179_v59 = vsub.f32 %v2719_v1, %v1177_v12 }
 0x270   : > { %v1180_v4 = vmul.f32 0.5, %v1178_v14  ;;  %v1181_v11 = vmul.f32 0.5, %v1179_v59 }
 0x272   : > { %2428 = vtanh.f32 %v1180_v4 }
 0x273   : > { %2430 = vtanh.f32 %v1181_v11 }
 0x27a   : > { %v1344_v15 = vpop.xlane.xlu1 %1343 }
 0x27b   : > { %v1345_v16 = vmul.f32 0.5, %v1344_v15 }
 0x27c   : > { %v2429_v21 = vpop.eup %2428 }
 0x27d   : > { %v2431_v17 = vpop.eup %2430  ;;  %v1184_v18 = vmul.f32 0.5, %v2429_v21  ;;  %v1346_v39 = vsub.f32 %v2725_v24, %v1345_v16  ;;  %v1347_v19 = vsub.f32 %v2728_v26, %v1345_v16 }
 0x27e   : > { %v1185_v23 = vmul.f32 0.5, %v2431_v17 }
 0x27f   : > { %v1186_v13 = vadd.f32 0.5, %v1184_v18  ;;  %v1348_v1 = vmul.f32 0.5, %v1346_v39  ;;  %v1349_v20 = vmul.f32 0.5, %v1347_v19 }
 0x280   : > { %v1187_v25 = vadd.f32 0.5, %v1185_v23 }
 0x281   : > { %1188 = vst [vmem:[%s2559_s30 + $0x60] sm:$0xff] %v1186_v13  ;;  %2432 = vtanh.f32 %v1348_v1 }
 0x282   : > { %1189 = vst [vmem:[%s2559_s30 + $0x68] sm:$0xff] %v1187_v25  ;;  %2434 = vtanh.f32 %v1349_v20 }
 0x28b   : > { %v2433_v32 = vpop.eup %2432 }
 0x28c   : > { %v2435_v27 = vpop.eup %2434  ;;  %v1352_v28 = vmul.f32 0.5, %v2433_v32 }
 0x28d   : > { %v1353_v29 = vmul.f32 0.5, %v2435_v27 }
 0x28e   : > { %v1354_v30 = vadd.f32 0.5, %v1352_v28 }
 0x28f   : > { %v1355_v31 = vadd.f32 0.5, %v1353_v29 }
 0x290   : > { %1356 = vst [vmem:[%s2559_s30 + $0x80] sm:$0xff] %v1354_v30 }
 0x291   : > { %1357 = vst [vmem:[%s2559_s30 + $0x88] sm:$0xff] %v1355_v31 }
 0x2ab   : > { %v1512_v24 = vpop.xlane.xlu0 %1511 }
 0x2ac   : > { %v1513_v26 = vmul.f32 0.5, %v1512_v24 }
 0x2ae   : > { %v1514_v33 = vsub.f32 %v2735_v40, %v1513_v26  ;;  %v1515_v34 = vsub.f32 %v2737_v43, %v1513_v26 }
 0x2b0   : > { %v1516_v35 = vmul.f32 0.5, %v1514_v33  ;;  %v1517_v36 = vmul.f32 0.5, %v1515_v34 }
 0x2b2   : > { %2436 = vtanh.f32 %v1516_v35 }
 0x2b3   : > { %2438 = vtanh.f32 %v1517_v36 }
 0x2ba   : > { %v1680_v37 = vpop.xlane.xlu1 %1679 }
 0x2bb   : > { %v1681_v38 = vmul.f32 0.5, %v1680_v37 }
 0x2bc   : > { %v2437_v41 = vpop.eup %2436 }
 0x2bd   : > { %v2439_v42 = vpop.eup %2438  ;;  %v1520_v6 = vmul.f32 0.5, %v2437_v41  ;;  %v1682_v10 = vsub.f32 %v2743_v54, %v1681_v38  ;;  %v1683_v44 = vsub.f32 %v2745_v56, %v1681_v38 }
 0x2be   : > { %v1521_v45 = vmul.f32 0.5, %v2439_v42 }
 0x2bf   : > { %v1522_v40 = vadd.f32 0.5, %v1520_v6  ;;  %v1684_v43 = vmul.f32 0.5, %v1682_v10  ;;  %v1685_v47 = vmul.f32 0.5, %v1683_v44 }
 0x2c0   : > { %v1523_v48 = vadd.f32 0.5, %v1521_v45 }
 0x2c1   : > { %1524 = vst [vmem:[%s2559_s30 + $0x90] sm:$0xff] %v1522_v40  ;;  %2440 = vtanh.f32 %v1684_v43 }
 0x2c2   : > { %1525 = vst [vmem:[%s2559_s30 + $0x98] sm:$0xff] %v1523_v48  ;;  %2442 = vtanh.f32 %v1685_v47 }
 0x2cb   : > { %v2441_v49 = vpop.eup %2440 }
 0x2cc   : > { %v2443_v50 = vpop.eup %2442  ;;  %v1688_v22 = vmul.f32 0.5, %v2441_v49 }
 0x2cd   : > { %v1689_v52 = vmul.f32 0.5, %v2443_v50 }
 0x2ce   : > { %v1690_v53 = vadd.f32 0.5, %v1688_v22 }
 0x2cf   : > { %v1691_v55 = vadd.f32 0.5, %v1689_v52 }
 0x2d0   : > { %1692 = vst [vmem:[%s2559_s30 + $0xa0] sm:$0xff] %v1690_v53 }
 0x2d1   : > { %1693 = vst [vmem:[%s2559_s30 + $0xa8] sm:$0xff] %v1691_v55 }
 0x2d2 PF: > { %s13_s9 = sadd.s32 1, %s2482_s9  }
 0x2d3   : > { %p10_p3 = scmp.ge.s32.totalorder %s13_s9, 4  }
 0x2d5   :  { %12 = sbr.rel (!%p10_p3) target bundleno = 1 (0x1), region = 71 }
 0x2dc   :  { %1715 = vsyncpa [#allocation3], 1 }
 0x2dd   :  { %1717 = vsyncpa [#allocation3 + $0x1], 1 }

</bundles_post_ra>
